<compile_context>
chip_gen: v7x
topology: tpu7x:2x2x1
jax: 0.10.0
libtpu: 0.0.40
codegen_flags: <defaults>
</compile_context>

<pallas_src>
import functools

import jax
import jax.numpy as jnp
from jax import lax
from jax.experimental import pallas as pl
from jax.experimental.pallas import tpu as pltpu

_VMEM_LIMIT = 32 * 1024 * 1024   # <= physical VMEM headroom on v5e/v6e/v7x
_VMEM_BUDGET = 24 * 1024 * 1024  # target for double-buffered block footprint


def _round_up(x, m):
    return (x + m - 1) // m * m


def _pick_tm(m_total, c, n):
    # The combine kernel is the VMEM-heaviest: 4 corner inputs + 1 output block
    # of (c, n, tm) f32 plus 3 (n, tm) vectors, all double-buffered.
    tm = 128
    for cand in (512, 256, 128):
        need = (5 * c * n + 3 * n) * cand * 4 * 2
        if need <= _VMEM_BUDGET:
            tm = cand
            break
    return min(tm, _round_up(m_total, 128))


def _pad_last(a, target):
    pad = target - a.shape[-1]
    if pad == 0:
        return a
    return jnp.pad(a, [(0, 0)] * (a.ndim - 1) + [(0, pad)])


def _sigmoid(v):
    return 1.0 / (1.0 + jnp.exp(-v))


# --------------------------------------------------------------------------
# Pallas kernels
# --------------------------------------------------------------------------
def _mm_bias_kernel(w_ref, x_ref, b_ref, o_ref):
    y = jnp.dot(w_ref[...], x_ref[...], preferred_element_type=jnp.float32)
    o_ref[...] = (y + b_ref[...]).astype(o_ref.dtype)


def _mm_bn_silu_kernel(w_ref, x_ref, s_ref, t_ref, o_ref):
    y = jnp.dot(w_ref[...], x_ref[...], preferred_element_type=jnp.float32)
    y = y * s_ref[...] + t_ref[...]                        # fused BatchNorm (eval)
    o_ref[...] = (y * _sigmoid(y)).astype(o_ref.dtype)     # fused SiLU


def _combine_kernel(hp, wp, xlt_ref, xrb_ref, xlb_ref, xrt_ref,
                    px_ref, py_ref, ml_ref, o_ref):
    hmax = float(hp - 1)
    wmax = float(wp - 1)
    px = px_ref[...]                          # (N, tm) row coords
    py = py_ref[...]                          # (N, tm) col coords
    fx = jnp.floor(px)
    fy = jnp.floor(py)
    qltx = jnp.clip(fx, 0.0, hmax)
    qlty = jnp.clip(fy, 0.0, wmax)
    qrbx = jnp.clip(fx + 1.0, 0.0, hmax)
    qrby = jnp.clip(fy + 1.0, 0.0, wmax)
    pxc = jnp.clip(px, 0.0, hmax)
    pyc = jnp.clip(py, 0.0, wmax)
    mod = _sigmoid(ml_ref[...])               # modulation (DCNv2)
    # Fold modulation into the bilinear corner weights (N,tm) instead of
    # multiplying the full (C,N,tm) combined tensor afterwards.
    g_lt = (1.0 + (qltx - pxc)) * (1.0 + (qlty - pyc)) * mod
    g_rb = (1.0 - (qrbx - pxc)) * (1.0 - (qrby - pyc)) * mod
    g_lb = (1.0 + (qltx - pxc)) * (1.0 - (qrby - pyc)) * mod
    g_rt = (1.0 - (qrbx - pxc)) * (1.0 + (qlty - pyc)) * mod
    xo = (g_lt[None, :, :] * xlt_ref[...]
          + g_rb[None, :, :] * xrb_ref[...]
          + g_lb[None, :, :] * xlb_ref[...]
          + g_rt[None, :, :] * xrt_ref[...])
    o_ref[...] = xo.astype(o_ref.dtype)


# --------------------------------------------------------------------------
# pallas_call wrappers (grid over lane-dense M tiles, marked "parallel")
# --------------------------------------------------------------------------
def _matmul_bias(w, x, b, tm):
    no, k = w.shape
    mp = x.shape[1]
    return pl.pallas_call(
        _mm_bias_kernel,
        out_shape=jax.ShapeDtypeStruct((no, mp), x.dtype),
        grid_spec=pltpu.PrefetchScalarGridSpec(
            num_scalar_prefetch=0,
            grid=(mp // tm,),
            in_specs=[
                pl.BlockSpec((no, k), lambda i: (0, 0)),
                pl.BlockSpec((k, tm), lambda i: (0, i)),
                pl.BlockSpec((no, 1), lambda i: (0, 0)),
            ],
            out_specs=pl.BlockSpec((no, tm), lambda i: (0, i)),
        ),
        compiler_params=pltpu.CompilerParams(
            dimension_semantics=("parallel",),
            vmem_limit_bytes=_VMEM_LIMIT,
        ),
    )(w, x, b)


def _matmul_bn_silu(w, x, scale, shift, tm):
    no, k = w.shape
    mp = x.shape[1]
    return pl.pallas_call(
        _mm_bn_silu_kernel,
        out_shape=jax.ShapeDtypeStruct((no, mp), x.dtype),
        grid_spec=pltpu.PrefetchScalarGridSpec(
            num_scalar_prefetch=0,
            grid=(mp // tm,),
            in_specs=[
                pl.BlockSpec((no, k), lambda i: (0, 0)),
                pl.BlockSpec((k, tm), lambda i: (0, i)),
                pl.BlockSpec((no, 1), lambda i: (0, 0)),
                pl.BlockSpec((no, 1), lambda i: (0, 0)),
            ],
            out_specs=pl.BlockSpec((no, tm), lambda i: (0, i)),
        ),
        compiler_params=pltpu.CompilerParams(
            dimension_semantics=("parallel",),
            vmem_limit_bytes=_VMEM_LIMIT,
        ),
    )(w, x, scale, shift)


def _deform_combine(x_lt, x_rb, x_lb, x_rt, px, py, mlog, hp, wp, tm):
    c, n, mp = x_lt.shape
    kern = functools.partial(_combine_kernel, hp, wp)
    x_spec = pl.BlockSpec((c, n, tm), lambda i: (0, 0, i))
    v_spec = pl.BlockSpec((n, tm), lambda i: (0, i))
    return pl.pallas_call(
        kern,
        out_shape=jax.ShapeDtypeStruct((c, n, mp), x_lt.dtype),
        grid_spec=pltpu.PrefetchScalarGridSpec(
            num_scalar_prefetch=0,
            grid=(mp // tm,),
            in_specs=[x_spec, x_spec, x_spec, x_spec, v_spec, v_spec, v_spec],
            out_specs=pl.BlockSpec((c, n, tm), lambda i: (0, 0, i)),
        ),
        compiler_params=pltpu.CompilerParams(
            dimension_semantics=("parallel",),
            vmem_limit_bytes=_VMEM_LIMIT,
        ),
    )(x_lt, x_rb, x_lb, x_rt, px, py, mlog)


# --------------------------------------------------------------------------
# DConv forward (Pallas path)
# --------------------------------------------------------------------------
def dconv_forward(x, params, *, ks=3, stride=1, pad=1, eps=1e-3,
                  return_intermediates=False):
    b, c, h_in, w_in = x.shape
    n = ks * ks
    c2 = params["conv_w"].shape[0]
    dt = x.dtype

    # p_conv / m_conv output spatial size (3x3, padding=1, stride)
    h = (h_in + 2 - 3) // stride + 1
    w = (w_in + 2 - 3) // stride + 1
    m_total = b * h * w
    tm = _pick_tm(m_total, c, n)
    mp = _round_up(m_total, tm)

    # ---- im2col for the fused p_conv + m_conv matmul ----
    xp1 = jnp.pad(x, ((0, 0), (0, 0), (1, 1), (1, 1)))
    cols = []
    for di in range(3):
        for dj in range(3):
            cols.append(xp1[:, :, di:di + (h - 1) * stride + 1:stride,
                               dj:dj + (w - 1) * stride + 1:stride])
    patches = jnp.stack(cols, axis=2)                         # (b, c, 9, h, w)
    patches = patches.transpose(1, 2, 0, 3, 4).reshape(c * 9, m_total)

    w_pm = jnp.concatenate([params["p_w"].reshape(2 * n, c * 9),
                            params["m_w"].reshape(n, c * 9)], axis=0).astype(dt)
    b_pm = jnp.concatenate([params["p_b"], params["m_b"]])[:, None].astype(dt)

    out_pm = _matmul_bias(w_pm, _pad_last(patches, mp), b_pm, tm)[:, :m_total]
    offset = out_pm[:2 * n]                                   # (2N, M) rows/cols
    m_logits = out_pm[2 * n:]                                 # (N, M)

    # ---- sampling positions p = (p_0 + p_n) + offset (same assoc. as torch) ----
    a = jnp.arange(-(ks - 1) // 2, (ks - 1) // 2 + 1, dtype=dt)
    p_n_x = jnp.repeat(a, ks)                                 # row offset / kernel pt
    p_n_y = jnp.tile(a, ks)                                   # col offset / kernel pt
    ii = jnp.arange(h, dtype=dt) * stride + 1.0
    jj = jnp.arange(w, dtype=dt) * stride + 1.0
    p0x = jnp.tile(jnp.broadcast_to(ii[:, None], (h, w)).reshape(-1), b)
    p0y = jnp.tile(jnp.broadcast_to(jj[None, :], (h, w)).reshape(-1), b)
    px = (p0x[None, :] + p_n_x[:, None]) + offset[:n]         # (N, M)
    py = (p0y[None, :] + p_n_y[:, None]) + offset[n:]         # (N, M)

    # ---- bilinear corner gather (data-dependent) ----
    # TODO(synk): this data-dependent gather stays in plain JAX; a Pallas version
    # would need per-element DMA gather / in-kernel jnp.take.
    hp = h_in + 2 * pad
    wp = w_in + 2 * pad
    x_pad = jnp.pad(x, ((0, 0), (0, 0), (pad, pad), (pad, pad))) if pad else x
    x_flat = x_pad.reshape(b, c, hp * wp)

    fx = jnp.floor(px)
    fy = jnp.floor(py)
    qltx = jnp.clip(fx, 0, hp - 1).astype(jnp.int32)
    qlty = jnp.clip(fy, 0, wp - 1).astype(jnp.int32)
    qrbx = jnp.clip(fx + 1, 0, hp - 1).astype(jnp.int32)
    qrby = jnp.clip(fy + 1, 0, wp - 1).astype(jnp.int32)

    def gather(ix, iy):
        idx = ix * wp + iy                                    # (N, M)
        idx = idx.reshape(n, b, h * w).transpose(1, 0, 2).reshape(b, 1, n * h * w)
        idx = jnp.broadcast_to(idx, (b, c, n * h * w))
        g = jnp.take_along_axis(x_flat, idx, axis=2)
        return g.reshape(b, c, n, h * w).transpose(1, 2, 0, 3).reshape(c, n, m_total)

    x_lt = gather(qltx, qlty)
    x_rb = gather(qrbx, qrby)
    x_lb = gather(qltx, qrby)
    x_rt = gather(qrbx, qlty)

    # ---- Pallas: bilinear weights + combine + sigmoid modulation ----
    x_off = _deform_combine(
        _pad_last(x_lt, mp), _pad_last(x_rb, mp),
        _pad_last(x_lb, mp), _pad_last(x_rt, mp),
        _pad_last(px, mp), _pad_last(py, mp), _pad_last(m_logits, mp),
        hp, wp, tm)                                           # (c, N, Mp)

    # ---- Pallas: final ks*ks conv == matmul over c*N, fused BN(eval) + SiLU ----
    # TODO(synk): BatchNorm is inference-mode (running stats); training-mode
    # batch statistics are not implemented.
    w_c = params["conv_w"].reshape(c2, c * n).astype(dt)
    scale = (params["bn_g"] / jnp.sqrt(params["bn_v"] + eps)).astype(dt)
    shift = (params["bn_b"] - params["bn_m"] * scale).astype(dt)
    y = _matmul_bn_silu(w_c, x_off.reshape(c * n, mp),
                        scale[:, None], shift[:, None], tm)
    y = y[:, :m_total].reshape(c2, b, h, w).transpose(1, 0, 2, 3)

    if return_intermediates:
        off_nchw = offset.reshape(2 * n, b, h, w).transpose(1, 0, 2, 3)
        ml_nchw = m_logits.reshape(n, b, h, w).transpose(1, 0, 2, 3)
        return y, off_nchw, ml_nchw
    return y


# --------------------------------------------------------------------------
# Pure-JAX references (mirror the PyTorch module) for correctness checks
# --------------------------------------------------------------------------
def _pm_conv_reference(x, params, stride):
    dn = ("NCHW", "OIHW", "NCHW")
    off = lax.conv_general_dilated(
        x, params["p_w"], (stride, stride), [(1, 1), (1, 1)],
        dimension_numbers=dn, precision=lax.Precision.HIGHEST)
    off = off + params["p_b"][None, :, None, None]
    ml = lax.conv_general_dilated(
        x, params["m_w"], (stride, stride), [(1, 1), (1, 1)],
        dimension_numbers=dn, precision=lax.Precision.HIGHEST)
    ml = ml + params["m_b"][None, :, None, None]
    return off, ml


def _deform_reference_from_offset(x, offset, mlog, params, *, ks, stride, pad, eps):
    """Pure-JAX mirror of DeformConv2d.forward (from `offset` on) + BN(eval) + SiLU."""
    b, c, h_in, w_in = x.shape
    n = ks * ks
    h, w = offset.shape[2], offset.shape[3]
    m = jax.nn.sigmoid(mlog)

    x_pad = jnp.pad(x, ((0, 0), (0, 0), (pad, pad), (pad, pad))) if pad else x
    hp, wp = x_pad.shape[2], x_pad.shape[3]

    a = jnp.arange(-(ks - 1) // 2, (ks - 1) // 2 + 1, dtype=x.dtype)
    p_n = jnp.concatenate([jnp.repeat(a, ks), jnp.tile(a, ks)]).reshape(1, 2 * n, 1, 1)
    ii = jnp.arange(h, dtype=x.dtype) * stride + 1.0
    jj = jnp.arange(w, dtype=x.dtype) * stride + 1.0
    p0x = jnp.broadcast_to(ii[:, None], (h, w))[None, None]
    p0y = jnp.broadcast_to(jj[None, :], (h, w))[None, None]
    p_0 = jnp.concatenate([jnp.tile(p0x, (1, n, 1, 1)),
                           jnp.tile(p0y, (1, n, 1, 1))], axis=1)
    p = (p_0 + p_n) + offset                                  # (b, 2N, h, w)
    p = p.transpose(0, 2, 3, 1)                               # (b, h, w, 2N)

    q_lt = jnp.floor(p)
    q_rb = q_lt + 1
    q_lt = jnp.concatenate([jnp.clip(q_lt[..., :n], 0, hp - 1),
                            jnp.clip(q_lt[..., n:], 0, wp - 1)], -1).astype(jnp.int32)
    q_rb = jnp.concatenate([jnp.clip(q_rb[..., :n], 0, hp - 1),
                            jnp.clip(q_rb[..., n:], 0, wp - 1)], -1).astype(jnp.int32)
    q_lb = jnp.concatenate([q_lt[..., :n], q_rb[..., n:]], -1)
    q_rt = jnp.concatenate([q_rb[..., :n], q_lt[..., n:]], -1)
    p = jnp.concatenate([jnp.clip(p[..., :n], 0, hp - 1),
                         jnp.clip(p[..., n:], 0, wp - 1)], -1)

    f = lambda q: q.astype(p.dtype)
    g_lt = (1 + (f(q_lt[..., :n]) - p[..., :n])) * (1 + (f(q_lt[..., n:]) - p[..., n:]))
    g_rb = (1 - (f(q_rb[..., :n]) - p[..., :n])) * (1 - (f(q_rb[..., n:]) - p[..., n:]))
    g_lb = (1 + (f(q_lb[..., :n]) - p[..., :n])) * (1 - (f(q_lb[..., n:]) - p[..., n:]))
    g_rt = (1 - (f(q_rt[..., :n]) - p[..., :n])) * (1 + (f(q_rt[..., n:]) - p[..., n:]))

    x_flat = x_pad.reshape(b, c, -1)

    def get_x_q(q):
        index = q[..., :n] * wp + q[..., n:]                  # (b, h, w, N)
        index = jnp.broadcast_to(index.reshape(b, 1, -1), (b, c, h * w * n))
        out = jnp.take_along_axis(x_flat, index, axis=2)
        return out.reshape(b, c, h, w, n)

    x_q_lt, x_q_rb, x_q_lb, x_q_rt = map(get_x_q, (q_lt, q_rb, q_lb, q_rt))

    x_offset = (g_lt[:, None] * x_q_lt + g_rb[:, None] * x_q_rb
                + g_lb[:, None] * x_q_lb + g_rt[:, None] * x_q_rt)
    x_offset = x_offset * m.transpose(0, 2, 3, 1)[:, None]

    x_offset = jnp.concatenate(
        [x_offset[..., s:s + ks].reshape(b, c, h, w * ks) for s in range(0, n, ks)],
        axis=-1).reshape(b, c, h * ks, w * ks)

    out = lax.conv_general_dilated(
        x_offset, params["conv_w"], (ks, ks), "VALID",
        dimension_numbers=("NCHW", "OIHW", "NCHW"),
        precision=lax.Precision.HIGHEST)
    scale = params["bn_g"] / jnp.sqrt(params["bn_v"] + eps)
    shift = params["bn_b"] - params["bn_m"] * scale
    out = out * scale[None, :, None, None] + shift[None, :, None, None]
    return out * jax.nn.sigmoid(out)


if __name__ == "__main__":
    key = jax.random.PRNGKey(0)
    b, c1, c2, hw = 2, 4, 8, 16
    ks, stride, pad = 3, 1, 1
    n = ks * ks

    keys = jax.random.split(key, 10)
    x = jax.random.normal(keys[0], (b, c1, hw, hw), dtype=jnp.float32)
    params = {
        "p_w": 0.1 * jax.random.normal(keys[1], (2 * n, c1, 3, 3), jnp.float32),
        "p_b": 0.1 * jax.random.normal(keys[2], (2 * n,), jnp.float32),
        "m_w": 0.1 * jax.random.normal(keys[3], (n, c1, 3, 3), jnp.float32),
        "m_b": 0.1 * jax.random.normal(keys[4], (n,), jnp.float32),
        "conv_w": 0.1 * jax.random.normal(keys[5], (c2, c1, ks, ks), jnp.float32),
        "bn_g": 1.0 + 0.1 * jax.random.normal(keys[6], (c2,), jnp.float32),
        "bn_b": 0.1 * jax.random.normal(keys[7], (c2,), jnp.float32),
        "bn_m": 0.1 * jax.random.normal(keys[8], (c2,), jnp.float32),
        "bn_v": 1.0 + 0.1 * jnp.abs(jax.random.normal(keys[9], (c2,), jnp.float32)),
    }

    fwd = jax.jit(functools.partial(dconv_forward, ks=ks, stride=stride, pad=pad,
                                    eps=1e-3, return_intermediates=True))
    out, off_p, ml_p = fwd(x, params)
    out = jax.block_until_ready(out)
    assert out.shape == (b, c2, hw, hw), out.shape

    # Tolerances allow for MXU f32 pass precision (bf16-decomposed passes) while
    # still catching any real indexing / layout bug (errors would be O(1)).
    TOL = dict(atol=2e-2, rtol=2e-2)

    # Check the fused p_conv/m_conv Pallas matmul against lax.conv.
    off_r, ml_r = _pm_conv_reference(x, params, stride)
    assert jnp.allclose(off_p, off_r, **TOL), \
        float(jnp.max(jnp.abs(off_p - off_r)))
    assert jnp.allclose(ml_p, ml_r, **TOL), \
        float(jnp.max(jnp.abs(ml_p - ml_r)))

    # Check the full deformable path against a pure-JAX mirror of the PyTorch
    # forward (fed the same offsets so floor() decisions are identical).
    ref = _deform_reference_from_offset(x, off_p, ml_p, params,
                                        ks=ks, stride=stride, pad=pad, eps=1e-3)
    assert jnp.allclose(out, ref, **TOL), \
        float(jnp.max(jnp.abs(out - ref)))

    print("KERNEL_OK")
</pallas_src>

<mosaic_0001>
module attributes {stable_mosaic.version = 11 : i64} {
  func.func @_mm_bias_kernel(%arg0: i32, %arg1: memref<27x36xf32, #tpu.memory_space<vmem>>, %arg2: memref<36x512xf32, #tpu.memory_space<vmem>>, %arg3: memref<27x1xf32, #tpu.memory_space<vmem>>, %arg4: memref<27x512xf32, #tpu.memory_space<vmem>>) attributes {dimension_semantics = [#tpu.dimension_semantics<parallel>], iteration_bounds = array<i64: 1>, scalar_prefetch = 0 : i64, scratch_operands = 0 : i64, tpu.core_type = #tpu.core_type<tc>, window_params = [{pipeline_mode = #tpu.pipeline_mode<synchronous>, transform_indices = @transform_0, window_bounds = array<i64: 27, 36>}, {transform_indices = @transform_1, window_bounds = array<i64: 36, 512>}, {pipeline_mode = #tpu.pipeline_mode<synchronous>, transform_indices = @transform_2, window_bounds = array<i64: 27, 1>}, {transform_indices = @transform_3, window_bounds = array<i64: 27, 512>}]} {
    %c0 = arith.constant 0 : index
    %c0_0 = arith.constant 0 : index
    %0 = vector.load %arg1[%c0, %c0_0] : memref<27x36xf32, #tpu.memory_space<vmem>>, vector<27x36xf32>
    %c0_1 = arith.constant 0 : index
    %c0_2 = arith.constant 0 : index
    %1 = vector.load %arg2[%c0_1, %c0_2] : memref<36x512xf32, #tpu.memory_space<vmem>>, vector<36x512xf32>
    %cst = arith.constant dense<0.000000e+00> : vector<27x512xf32>
    %2 = tpu.matmul %0, %1, %cst {dimension_numbers = #tpu.dot_dimension_numbers<[1], [0], [0], [1], [0, 0, 1, 1], [], []>} : vector<27x36xf32>, vector<36x512xf32>, vector<27x512xf32> -> vector<27x512xf32>
    %c0_3 = arith.constant 0 : index
    %c0_4 = arith.constant 0 : index
    %3 = vector.load %arg3[%c0_3, %c0_4] : memref<27x1xf32, #tpu.memory_space<vmem>>, vector<27x1xf32>
    %4 = vector.broadcast %3 : vector<27x1xf32> to vector<27x512xf32>
    %5 = arith.addf %2, %4 : vector<27x512xf32>
    %c0_5 = arith.constant 0 : index
    %c0_6 = arith.constant 0 : index
    %6 = vector.load %arg4[%c0_5, %c0_6] : memref<27x512xf32, #tpu.memory_space<vmem>>, vector<27x512xf32>
    tpu.vector_store %arg4[%c0_5, %c0_6], %5 {strides = array<i32>} : memref<27x512xf32, #tpu.memory_space<vmem>>, vector<27x512xf32>,
    return
  }
  func.func @transform_0(%arg0: i32) -> (i32, i32) {
    %c0_i32 = arith.constant 0 : i32
    %c0_i32_0 = arith.constant 0 : i32
    %c0_i32_1 = arith.constant 0 : i32
    return %c0_i32, %c0_i32_0 : i32, i32
  }
  func.func @transform_1(%arg0: i32) -> (i32, i32) {
    %c0_i32 = arith.constant 0 : i32
    %c0_i32_0 = arith.constant 0 : i32
    return %c0_i32, %arg0 : i32, i32
  }
  func.func @transform_2(%arg0: i32) -> (i32, i32) {
    %c0_i32 = arith.constant 0 : i32
    %c0_i32_0 = arith.constant 0 : i32
    %c0_i32_1 = arith.constant 0 : i32
    return %c0_i32, %c0_i32_0 : i32, i32
  }
  func.func @transform_3(%arg0: i32) -> (i32, i32) {
    %c0_i32 = arith.constant 0 : i32
    %c0_i32_0 = arith.constant 0 : i32
    return %c0_i32, %arg0 : i32, i32
  }
}

module attributes {stable_mosaic.version = 11 : i64} {
  func.func @_combine_kernel(%arg0: i32, %arg1: memref<4x9x512xf32, #tpu.memory_space<vmem>>, %arg2: memref<4x9x512xf32, #tpu.memory_space<vmem>>, %arg3: memref<4x9x512xf32, #tpu.memory_space<vmem>>, %arg4: memref<4x9x512xf32, #tpu.memory_space<vmem>>, %arg5: memref<9x512xf32, #tpu.memory_space<vmem>>, %arg6: memref<9x512xf32, #tpu.memory_space<vmem>>, %arg7: memref<9x512xf32, #tpu.memory_space<vmem>>, %arg8: memref<4x9x512xf32, #tpu.memory_space<vmem>>) attributes {dimension_semantics = [#tpu.dimension_semantics<parallel>], iteration_bounds = array<i64: 1>, scalar_prefetch = 0 : i64, scratch_operands = 0 : i64, tpu.core_type = #tpu.core_type<tc>, window_params = [{transform_indices = @transform_0, window_bounds = array<i64: 4, 9, 512>}, {transform_indices = @transform_1, window_bounds = array<i64: 4, 9, 512>}, {transform_indices = @transform_2, window_bounds = array<i64: 4, 9, 512>}, {transform_indices = @transform_3, window_bounds = array<i64: 4, 9, 512>}, {transform_indices = @transform_4, window_bounds = array<i64: 9, 512>}, {transform_indices = @transform_5, window_bounds = array<i64: 9, 512>}, {transform_indices = @transform_6, window_bounds = array<i64: 9, 512>}, {transform_indices = @transform_7, window_bounds = array<i64: 4, 9, 512>}]} {
    %c0 = arith.constant 0 : index
    %c0_0 = arith.constant 0 : index
    %0 = vector.load %arg5[%c0, %c0_0] : memref<9x512xf32, #tpu.memory_space<vmem>>, vector<9x512xf32>
    %c0_1 = arith.constant 0 : index
    %c0_2 = arith.constant 0 : index
    %1 = vector.load %arg6[%c0_1, %c0_2] : memref<9x512xf32, #tpu.memory_space<vmem>>, vector<9x512xf32>
    %2 = math.floor %0 : vector<9x512xf32>
    %3 = math.floor %1 : vector<9x512xf32>
    %cst = arith.constant 0.000000e+00 : f32
    %cst_3 = arith.constant 1.700000e+01 : f32
    %4 = vector.broadcast %cst : f32 to vector<9x512xf32>
    %5 = arith.maximumf %4, %2 : vector<9x512xf32>
    %6 = vector.broadcast %cst_3 : f32 to vector<9x512xf32>
    %7 = arith.minimumf %6, %5 : vector<9x512xf32>
    %cst_4 = arith.constant 0.000000e+00 : f32
    %cst_5 = arith.constant 1.700000e+01 : f32
    %8 = vector.broadcast %cst_4 : f32 to vector<9x512xf32>
    %9 = arith.maximumf %8, %3 : vector<9x512xf32>
    %10 = vector.broadcast %cst_5 : f32 to vector<9x512xf32>
    %11 = arith.minimumf %10, %9 : vector<9x512xf32>
    %cst_6 = arith.constant 1.000000e+00 : f32
    %12 = vector.broadcast %cst_6 : f32 to vector<9x512xf32>
    %13 = arith.addf %2, %12 : vector<9x512xf32>
    %cst_7 = arith.constant 0.000000e+00 : f32
    %cst_8 = arith.constant 1.700000e+01 : f32
    %14 = vector.broadcast %cst_7 : f32 to vector<9x512xf32>
    %15 = arith.maximumf %14, %13 : vector<9x512xf32>
    %16 = vector.broadcast %cst_8 : f32 to vector<9x512xf32>
    %17 = arith.minimumf %16, %15 : vector<9x512xf32>
    %cst_9 = arith.constant 1.000000e+00 : f32
    %18 = vector.broadcast %cst_9 : f32 to vector<9x512xf32>
    %19 = arith.addf %3, %18 : vector<9x512xf32>
    %cst_10 = arith.constant 0.000000e+00 : f32
    %cst_11 = arith.constant 1.700000e+01 : f32
    %20 = vector.broadcast %cst_10 : f32 to vector<9x512xf32>
    %21 = arith.maximumf %20, %19 : vector<9x512xf32>
    %22 = vector.broadcast %cst_11 : f32 to vector<9x512xf32>
    %23 = arith.minimumf %22, %21 : vector<9x512xf32>
    %cst_12 = arith.constant 0.000000e+00 : f32
    %cst_13 = arith.constant 1.700000e+01 : f32
    %24 = vector.broadcast %cst_12 : f32 to vector<9x512xf32>
    %25 = arith.maximumf %24, %0 : vector<9x512xf32>
    %26 = vector.broadcast %cst_13 : f32 to vector<9x512xf32>
    %27 = arith.minimumf %26, %25 : vector<9x512xf32>
    %cst_14 = arith.constant 0.000000e+00 : f32
    %cst_15 = arith.constant 1.700000e+01 : f32
    %28 = vector.broadcast %cst_14 : f32 to vector<9x512xf32>
    %29 = arith.maximumf %28, %1 : vector<9x512xf32>
    %30 = vector.broadcast %cst_15 : f32 to vector<9x512xf32>
    %31 = arith.minimumf %30, %29 : vector<9x512xf32>
    %c0_16 = arith.constant 0 : index
    %c0_17 = arith.constant 0 : index
    %32 = vector.load %arg7[%c0_16, %c0_17] : memref<9x512xf32, #tpu.memory_space<vmem>>, vector<9x512xf32>
    %cst_18 = arith.constant 0.000000e+00 : f32
    %33 = vector.broadcast %cst_18 : f32 to vector<9x512xf32>
    %34 = arith.subf %33, %32 : vector<9x512xf32>
    %35 = math.exp %34 : vector<9x512xf32>
    %cst_19 = arith.constant 1.000000e+00 : f32
    %36 = vector.broadcast %cst_19 : f32 to vector<9x512xf32>
    %37 = arith.addf %36, %35 : vector<9x512xf32>
    %cst_20 = arith.constant 1.000000e+00 : f32
    %38 = vector.broadcast %cst_20 : f32 to vector<9x512xf32>
    %39 = arith.divf %38, %37 : vector<9x512xf32>
    %40 = arith.subf %7, %27 : vector<9x512xf32>
    %cst_21 = arith.constant 1.000000e+00 : f32
    %41 = vector.broadcast %cst_21 : f32 to vector<9x512xf32>
    %42 = arith.addf %41, %40 : vector<9x512xf32>
    %43 = arith.subf %11, %31 : vector<9x512xf32>
    %cst_22 = arith.constant 1.000000e+00 : f32
    %44 = vector.broadcast %cst_22 : f32 to vector<9x512xf32>
    %45 = arith.addf %44, %43 : vector<9x512xf32>
    %46 = arith.mulf %42, %45 : vector<9x512xf32>
    %47 = arith.mulf %46, %39 : vector<9x512xf32>
    %48 = arith.subf %17, %27 : vector<9x512xf32>
    %cst_23 = arith.constant 1.000000e+00 : f32
    %49 = vector.broadcast %cst_23 : f32 to vector<9x512xf32>
    %50 = arith.subf %49, %48 : vector<9x512xf32>
    %51 = arith.subf %23, %31 : vector<9x512xf32>
    %cst_24 = arith.constant 1.000000e+00 : f32
    %52 = vector.broadcast %cst_24 : f32 to vector<9x512xf32>
    %53 = arith.subf %52, %51 : vector<9x512xf32>
    %54 = arith.mulf %50, %53 : vector<9x512xf32>
    %55 = arith.mulf %54, %39 : vector<9x512xf32>
    %56 = arith.subf %7, %27 : vector<9x512xf32>
    %cst_25 = arith.constant 1.000000e+00 : f32
    %57 = vector.broadcast %cst_25 : f32 to vector<9x512xf32>
    %58 = arith.addf %57, %56 : vector<9x512xf32>
    %59 = arith.subf %23, %31 : vector<9x512xf32>
    %cst_26 = arith.constant 1.000000e+00 : f32
    %60 = vector.broadcast %cst_26 : f32 to vector<9x512xf32>
    %61 = arith.subf %60, %59 : vector<9x512xf32>
    %62 = arith.mulf %58, %61 : vector<9x512xf32>
    %63 = arith.mulf %62, %39 : vector<9x512xf32>
    %64 = arith.subf %17, %27 : vector<9x512xf32>
    %cst_27 = arith.constant 1.000000e+00 : f32
    %65 = vector.broadcast %cst_27 : f32 to vector<9x512xf32>
    %66 = arith.subf %65, %64 : vector<9x512xf32>
    %67 = arith.subf %11, %31 : vector<9x512xf32>
    %cst_28 = arith.constant 1.000000e+00 : f32
    %68 = vector.broadcast %cst_28 : f32 to vector<9x512xf32>
    %69 = arith.addf %68, %67 : vector<9x512xf32>
    %70 = arith.mulf %66, %69 : vector<9x512xf32>
    %71 = arith.mulf %70, %39 : vector<9x512xf32>
    %72 = vector.shape_cast %47 : vector<9x512xf32> to vector<1x9x512xf32>
    %c0_29 = arith.constant 0 : index
    %c0_30 = arith.constant 0 : index
    %c0_31 = arith.constant 0 : index
    %73 = vector.load %arg1[%c0_29, %c0_30, %c0_31] : memref<4x9x512xf32, #tpu.memory_space<vmem>>, vector<4x9x512xf32>
    %74 = vector.broadcast %72 : vector<1x9x512xf32> to vector<4x9x512xf32>
    %75 = arith.mulf %74, %73 : vector<4x9x512xf32>
    %76 = vector.shape_cast %55 : vector<9x512xf32> to vector<1x9x512xf32>
    %c0_32 = arith.constant 0 : index
    %c0_33 = arith.constant 0 : index
    %c0_34 = arith.constant 0 : index
    %77 = vector.load %arg2[%c0_32, %c0_33, %c0_34] : memref<4x9x512xf32, #tpu.memory_space<vmem>>, vector<4x9x512xf32>
    %78 = vector.broadcast %76 : vector<1x9x512xf32> to vector<4x9x512xf32>
    %79 = arith.mulf %78, %77 : vector<4x9x512xf32>
    %80 = arith.addf %75, %79 : vector<4x9x512xf32>
    %81 = vector.shape_cast %63 : vector<9x512xf32> to vector<1x9x512xf32>
    %c0_35 = arith.constant 0 : index
    %c0_36 = arith.constant 0 : index
    %c0_37 = arith.constant 0 : index
    %82 = vector.load %arg3[%c0_35, %c0_36, %c0_37] : memref<4x9x512xf32, #tpu.memory_space<vmem>>, vector<4x9x512xf32>
    %83 = vector.broadcast %81 : vector<1x9x512xf32> to vector<4x9x512xf32>
    %84 = arith.mulf %83, %82 : vector<4x9x512xf32>
    %85 = arith.addf %80, %84 : vector<4x9x512xf32>
    %86 = vector.shape_cast %71 : vector<9x512xf32> to vector<1x9x512xf32>
    %c0_38 = arith.constant 0 : index
    %c0_39 = arith.constant 0 : index
    %c0_40 = arith.constant 0 : index
    %87 = vector.load %arg4[%c0_38, %c0_39, %c0_40] : memref<4x9x512xf32, #tpu.memory_space<vmem>>, vector<4x9x512xf32>
    %88 = vector.broadcast %86 : vector<1x9x512xf32> to vector<4x9x512xf32>
    %89 = arith.mulf %88, %87 : vector<4x9x512xf32>
    %90 = arith.addf %85, %89 : vector<4x9x512xf32>
    %c0_41 = arith.constant 0 : index
    %c0_42 = arith.constant 0 : index
    %c0_43 = arith.constant 0 : index
    %91 = vector.load %arg8[%c0_41, %c0_42, %c0_43] : memref<4x9x512xf32, #tpu.memory_space<vmem>>, vector<4x9x512xf32>
    tpu.vector_store %arg8[%c0_41, %c0_42, %c0_43], %90 {strides = array<i32>} : memref<4x9x512xf32, #tpu.memory_space<vmem>>, vector<4x9x512xf32>,
    return
  }
  func.func @transform_0(%arg0: i32) -> (i32, i32, i32) {
    %c0_i32 = arith.constant 0 : i32
    %c0_i32_0 = arith.constant 0 : i32
    %c0_i32_1 = arith.constant 0 : i32
    return %c0_i32, %c0_i32_0, %arg0 : i32, i32, i32
  }
  func.func @transform_1(%arg0: i32) -> (i32, i32, i32) {
    %c0_i32 = arith.constant 0 : i32
    %c0_i32_0 = arith.constant 0 : i32
    %c0_i32_1 = arith.constant 0 : i32
    return %c0_i32, %c0_i32_0, %arg0 : i32, i32, i32
  }
  func.func @transform_2(%arg0: i32) -> (i32, i32, i32) {
    %c0_i32 = arith.constant 0 : i32
    %c0_i32_0 = arith.constant 0 : i32
    %c0_i32_1 = arith.constant 0 : i32
    return %c0_i32, %c0_i32_0, %arg0 : i32, i32, i32
  }
  func.func @transform_3(%arg0: i32) -> (i32, i32, i32) {
    %c0_i32 = arith.constant 0 : i32
    %c0_i32_0 = arith.constant 0 : i32
    %c0_i32_1 = arith.constant 0 : i32
    return %c0_i32, %c0_i32_0, %arg0 : i32, i32, i32
  }
  func.func @transform_4(%arg0: i32) -> (i32, i32) {
    %c0_i32 = arith.constant 0 : i32
    %c0_i32_0 = arith.constant 0 : i32
    return %c0_i32, %arg0 : i32, i32
  }
  func.func @transform_5(%arg0: i32) -> (i32, i32) {
    %c0_i32 = arith.constant 0 : i32
    %c0_i32_0 = arith.constant 0 : i32
    return %c0_i32, %arg0 : i32, i32
  }
  func.func @transform_6(%arg0: i32) -> (i32, i32) {
    %c0_i32 = arith.constant 0 : i32
    %c0_i32_0 = arith.constant 0 : i32
    return %c0_i32, %arg0 : i32, i32
  }
  func.func @transform_7(%arg0: i32) -> (i32, i32, i32) {
    %c0_i32 = arith.constant 0 : i32
    %c0_i32_0 = arith.constant 0 : i32
    %c0_i32_1 = arith.constant 0 : i32
    return %c0_i32, %c0_i32_0, %arg0 : i32, i32, i32
  }
}

module attributes {stable_mosaic.version = 11 : i64} {
  func.func @_mm_bn_silu_kernel(%arg0: i32, %arg1: memref<8x36xf32, #tpu.memory_space<vmem>>, %arg2: memref<36x512xf32, #tpu.memory_space<vmem>>, %arg3: memref<8x1xf32, #tpu.memory_space<vmem>>, %arg4: memref<8x1xf32, #tpu.memory_space<vmem>>, %arg5: memref<8x512xf32, #tpu.memory_space<vmem>>) attributes {dimension_semantics = [#tpu.dimension_semantics<parallel>], iteration_bounds = array<i64: 1>, scalar_prefetch = 0 : i64, scratch_operands = 0 : i64, tpu.core_type = #tpu.core_type<tc>, window_params = [{pipeline_mode = #tpu.pipeline_mode<synchronous>, transform_indices = @transform_0, window_bounds = array<i64: 8, 36>}, {transform_indices = @transform_1, window_bounds = array<i64: 36, 512>}, {pipeline_mode = #tpu.pipeline_mode<synchronous>, transform_indices = @transform_2, window_bounds = array<i64: 8, 1>}, {pipeline_mode = #tpu.pipeline_mode<synchronous>, transform_indices = @transform_3, window_bounds = array<i64: 8, 1>}, {transform_indices = @transform_4, window_bounds = array<i64: 8, 512>}]} {
    %c0 = arith.constant 0 : index
    %c0_0 = arith.constant 0 : index
    %0 = vector.load %arg1[%c0, %c0_0] : memref<8x36xf32, #tpu.memory_space<vmem>>, vector<8x36xf32>
    %c0_1 = arith.constant 0 : index
    %c0_2 = arith.constant 0 : index
    %1 = vector.load %arg2[%c0_1, %c0_2] : memref<36x512xf32, #tpu.memory_space<vmem>>, vector<36x512xf32>
    %cst = arith.constant dense<0.000000e+00> : vector<8x512xf32>
    %2 = tpu.matmul %0, %1, %cst {dimension_numbers = #tpu.dot_dimension_numbers<[1], [0], [0], [1], [0, 0, 1, 1], [], []>} : vector<8x36xf32>, vector<36x512xf32>, vector<8x512xf32> -> vector<8x512xf32>
    %c0_3 = arith.constant 0 : index
    %c0_4 = arith.constant 0 : index
    %3 = vector.load %arg3[%c0_3, %c0_4] : memref<8x1xf32, #tpu.memory_space<vmem>>, vector<8x1xf32>
    %4 = vector.broadcast %3 : vector<8x1xf32> to vector<8x512xf32>
    %5 = arith.mulf %2, %4 : vector<8x512xf32>
    %c0_5 = arith.constant 0 : index
    %c0_6 = arith.constant 0 : index
    %6 = vector.load %arg4[%c0_5, %c0_6] : memref<8x1xf32, #tpu.memory_space<vmem>>, vector<8x1xf32>
    %7 = vector.broadcast %6 : vector<8x1xf32> to vector<8x512xf32>
    %8 = arith.addf %5, %7 : vector<8x512xf32>
    %cst_7 = arith.constant 0.000000e+00 : f32
    %9 = vector.broadcast %cst_7 : f32 to vector<8x512xf32>
    %10 = arith.subf %9, %8 : vector<8x512xf32>
    %11 = math.exp %10 : vector<8x512xf32>
    %cst_8 = arith.constant 1.000000e+00 : f32
    %12 = vector.broadcast %cst_8 : f32 to vector<8x512xf32>
    %13 = arith.addf %12, %11 : vector<8x512xf32>
    %cst_9 = arith.constant 1.000000e+00 : f32
    %14 = vector.broadcast %cst_9 : f32 to vector<8x512xf32>
    %15 = arith.divf %14, %13 : vector<8x512xf32>
    %16 = arith.mulf %8, %15 : vector<8x512xf32>
    %c0_10 = arith.constant 0 : index
    %c0_11 = arith.constant 0 : index
    %17 = vector.load %arg5[%c0_10, %c0_11] : memref<8x512xf32, #tpu.memory_space<vmem>>, vector<8x512xf32>
    tpu.vector_store %arg5[%c0_10, %c0_11], %16 {strides = array<i32>} : memref<8x512xf32, #tpu.memory_space<vmem>>, vector<8x512xf32>,
    return
  }
  func.func @transform_0(%arg0: i32) -> (i32, i32) {
    %c0_i32 = arith.constant 0 : i32
    %c0_i32_0 = arith.constant 0 : i32
    %c0_i32_1 = arith.constant 0 : i32
    return %c0_i32, %c0_i32_0 : i32, i32
  }
  func.func @transform_1(%arg0: i32) -> (i32, i32) {
    %c0_i32 = arith.constant 0 : i32
    %c0_i32_0 = arith.constant 0 : i32
    return %c0_i32, %arg0 : i32, i32
  }
  func.func @transform_2(%arg0: i32) -> (i32, i32) {
    %c0_i32 = arith.constant 0 : i32
    %c0_i32_0 = arith.constant 0 : i32
    %c0_i32_1 = arith.constant 0 : i32
    return %c0_i32, %c0_i32_0 : i32, i32
  }
  func.func @transform_3(%arg0: i32) -> (i32, i32) {
    %c0_i32 = arith.constant 0 : i32
    %c0_i32_0 = arith.constant 0 : i32
    %c0_i32_1 = arith.constant 0 : i32
    return %c0_i32, %c0_i32_0 : i32, i32
  }
  func.func @transform_4(%arg0: i32) -> (i32, i32) {
    %c0_i32 = arith.constant 0 : i32
    %c0_i32_0 = arith.constant 0 : i32
    return %c0_i32, %arg0 : i32, i32
  }
}

</mosaic_0001>

<bundles_post_ra>
// kernel: tile.18
= control target key start
LH: loop header
LB: loop body
LE: loop exit
PB: predicated region body
PF: predicated region fallthrough
CT: control target
= control target key end

     0   :  { %s7_s6 = smov 3  ;;  %s21_s9 = smov 3  ;;  %vm4_vm0 = vcmask 130048   ;;  %vm11_vm1 = vcmask 1048448   ;;  %vm18_vm2 = vcmask 917248   ;;  %vm25_vm3 = vcmask 786048   ;;  %s119_s0 = inlined_call_operand.vmem [shape: f32[16,16], index: 0, kind: input, shape index: {}]   ;;  %s120_s1 = inlined_call_operand.vmem [shape: f32[256], index: 1, kind: output, shape index: {}]  }
   0x1   :  { %v61_v0 = vld [vmem:[%s119_s0 + $0x7] ss:$8 sm:%s7_s6]   ;;  %s75_s10 = smov 112   ;;  %v63_v1 = vld [vmem:[%s119_s0 + $0x5] ss:$8 sm:%s21_s9]   ;;  %s14_s13 = smov 3 }
   0x2   :  { %9 = vrot.lane.b32.xlu0 %v61_v0, %s75_s10  ;;  %s76_s14 = smov 80   ;;  %v62_v2 = vld [vmem:[%s119_s0 + $0x6] ss:$8 sm:%s14_s13]   ;;  %s28_s17 = smov 3  ;;  %vm32_vm4 = vcmask 654848   ;;  %vm39_vm5 = vcmask 523648  }
   0x3   :  { %23 = vrot.lane.b32.xlu1 %v63_v1, %s76_s14  ;;  %v64_v3 = vld [vmem:[%s119_s0 + $0x4] ss:$8 sm:%s28_s17]   ;;  %s35_s20 = smov 3  ;;  %s42_s21 = smov 3  ;;  %vm46_vm6 = vcmask 392448   ;;  %vm53_vm7 = vcmask 261248  }
   0x4   :  { %s77_s22 = smov 96   ;;  %s78_s23 = smov 64   ;;  %v65_v4 = vld [vmem:[%s119_s0 + $0x3] ss:$8 sm:%s35_s20]   ;;  %v66_v5 = vld [vmem:[%s119_s0 + $0x2] ss:$8 sm:%s42_s21]  }
   0x5   :  { %s2_s26 = smov 3  ;;  %s49_s29 = smov 3 }
   0x6   :  { %16 = vrot.lane.b32.xlu0 %v62_v2, %s77_s22  ;;  %v3_v6 = vld [vmem:[%s119_s0] ss:$8 sm:%s2_s26]   ;;  %s79_s3 = smov 48   ;;  %s80_s4 = smov 32  }
   0x7   :  { %30 = vrot.lane.b32.xlu1 %v64_v3, %s78_s23  ;;  %5 = vst.msk [vmem:[#allocation0] sm:$0x3] %vm4_vm0, %v3_v6   ;;  %v67_v7 = vld [vmem:[%s119_s0 + $0x1] ss:$8 sm:%s49_s29]   ;;  %s81_s0 = smov 16  }
   0xa   :  { %37 = vrot.lane.b32.xlu0 %v65_v4, %s79_s3 }
   0xb   :  { %44 = vrot.lane.b32.xlu1 %v66_v5, %s80_s4 }
   0xe   :  { %51 = vrot.lane.b32.xlu0 %v67_v7, %s81_s0 }
  0x74   :  { %v10_v8 = vpop.permute.xlu0 %9  }
  0x75   :  { %12 = vst.msk [vmem:[#allocation0] sm:$0x3] %vm11_vm1, %v10_v8   ;;  %v24_v9 = vpop.permute.xlu1 %23  }
  0x78   :  { %v17_v10 = vpop.permute.xlu0 %16  }
  0x79   :  { %19 = vst.msk [vmem:[#allocation0] sm:$0x3] %vm18_vm2, %v17_v10   ;;  %v31_v11 = vpop.permute.xlu1 %30  }
  0x7a   :  { %26 = vst.msk [vmem:[#allocation0] sm:$0x3] %vm25_vm3, %v24_v9  }
  0x7b   :  { %33 = vst.msk [vmem:[#allocation0] sm:$0x3] %vm32_vm4, %v31_v11  }
  0x7c   :  { %v38_v12 = vpop.permute.xlu0 %37  }
  0x7d   :  { %40 = vst.msk [vmem:[#allocation0] sm:$0x3] %vm39_vm5, %v38_v12   ;;  %v45_v13 = vpop.permute.xlu1 %44  }
  0x7e   :  { %47 = vst.msk [vmem:[#allocation0] sm:$0x3] %vm46_vm6, %v45_v13  }
  0x80   :  { %v52_v14 = vpop.permute.xlu0 %51  }
  0x81   :  { %54 = vst.msk [vmem:[#allocation0] sm:$0x3] %vm53_vm7, %v52_v14  }
  0x88   :  { %v58_v15 = vld [vmem:[#allocation0] sm:$0x3] }
  0x89   :  { %60 = vst [vmem:[%s120_s1] sm:$0x3] %v58_v15 }

// kernel: tile.16
= control target key start
LH: loop header
LB: loop body
LE: loop exit
PB: predicated region body
PF: predicated region fallthrough
CT: control target
= control target key end

     0   :  { %s22_s0 = inlined_call_operand.vmem [shape: f32[3], index: 0, kind: input, shape index: {}]   ;;  %s23_s1 = inlined_call_operand.vmem [shape: f32[3,3], index: 1, kind: output, shape index: {}]  }
   0x1   :  { %v4_v0 = vld [vmem:[%s22_s0] ss:$0 sm:$0xff] }
   0x2   :  { %5 = vst [vmem:[%s23_s1] sm:$0xf] %v4_v0 }

// kernel: dconv_forward.3
= control target key start
LH: loop header
LB: loop body
LE: loop exit
PB: predicated region body
PF: predicated region fallthrough
CT: control target
= control target key end

     0   :  { %v318_v3 = vmov 0.0   ;;  %v319_v8 = vmov 0   ;;  %vm75_vm0 = vcmask 1043456   ;;  %vm62_vm1 = vcmask 293888   ;;  %s492_s1 = inlined_call_operand.vmem [shape: f32[36,512], index: 1, kind: input, shape index: {}]   ;;  %s493_s2 = inlined_call_operand.vmem [shape: f32[27,1], index: 2, kind: input, shape index: {}]   ;;  %s494_s0 = inlined_call_operand.vmem [shape: f32[27,36], index: 0, kind: input, shape index: {}]   ;;  %s495_s3 = inlined_call_operand.vmem [shape: f32[27,512], index: 3, kind: output, shape index: {}]  }
   0x1   :  { %v19_v0 = vld [vmem:[%s492_s1 + $0x8] sm:$0xff]  ;;  %v21_v2 = vld [vmem:[%s492_s1 + $0x18] sm:$0xff]  ;;  %152 = vmatprep.mubr.f32.mxu0 %v318_v3  ;;  %241 = vmatprep.mubr.f32.mxu1 %v318_v3  ;;  %v18_v6 = vld [vmem:[%s492_s1] sm:$0xff] }
   0x2   :  { %v23_v1 = vld [vmem:[%s492_s1 + $0x28] sm:$0xff]  ;;  %v25_v5 = vld [vmem:[%s492_s1 + $0x38] sm:$0xff]  ;;  %v22_v7 = vld [vmem:[%s492_s1 + $0x20] sm:$0xff]  ;;  %316 = vset.pattern.permute.xlu0 %v319_v8  ;;  %317 = vset.pattern.permute.xlu1 %v319_v8 }
   0x3   :  { %v298_v4 = vpack.c.bf16 %v23_v1, %v19_v0  ;;  %v306_v9 = vpack.c.bf16 %v25_v5, %v21_v2  ;;  %v300_v10 = vpack.c.bf16 %v22_v7, %v18_v6  ;;  %v20_v11 = vld [vmem:[%s492_s1 + $0x10] sm:$0xff]  ;;  %v27_v13 = vld [vmem:[%s492_s1 + $0x48] sm:$0xff]  ;;  %v29_v16 = vld [vmem:[%s492_s1 + $0x58] sm:$0xff] }
   0x4   :  { %v24_v12 = vld [vmem:[%s492_s1 + $0x30] sm:$0xff]  ;;  %v31_v15 = vld [vmem:[%s492_s1 + $0x68] sm:$0xff]  ;;  %v33_v17 = vld [vmem:[%s492_s1 + $0x78] sm:$0xff] }
   0x5   :  { %299 = vmatprep.subr.bf16.mxu0 %v298_v4  ;;  %v308_v14 = vpack.c.bf16 %v24_v12, %v20_v11  ;;  %307 = vmatprep.subr.bf16.mxu1 %v306_v9  ;;  %v302_v18 = vpack.c.bf16 %v31_v15, %v27_v13  ;;  %v310_v19 = vpack.c.bf16 %v33_v17, %v29_v16  ;;  %v26_v20 = vld [vmem:[%s492_s1 + $0x40] sm:$0xff]  ;;  %v28_v22 = vld [vmem:[%s492_s1 + $0x50] sm:$0xff]  ;;  %v35_v26 = vld [vmem:[%s492_s1 + $0x88] sm:$0xf] }
   0x6   :  { %301 = vmatpush1.bf16.msra.mxu0 %v300_v10  ;;  %v30_v21 = vld [vmem:[%s492_s1 + $0x60] sm:$0xff]  ;;  %v32_v24 = vld [vmem:[%s492_s1 + $0x70] sm:$0xff]  ;;  %v37_v27 = vld [vmem:[%s492_s1 + $0x98] sm:$0xf] }
   0x7   :  { %309 = vmatpush1.bf16.msra.mxu1 %v308_v14  ;;  %v304_v23 = vpack.c.bf16 %v30_v21, %v26_v20  ;;  %303 = vmatprep.subr.bf16.mxu0 %v302_v18  ;;  %v312_v25 = vpack.c.bf16 %v32_v24, %v28_v22  ;;  %v38_v28 = vld [vmem:[%s493_s2] sm:$0xff]  ;;  %v40_v29 = vld [vmem:[%s493_s2 + $0x10] sm:$0xff]  ;;  %v39_v33 = vld [vmem:[%s493_s2 + $0x8] sm:$0xff] }
   0x8   :  { %311 = vmatprep.subr.bf16.mxu1 %v310_v19  ;;  %v34_v30 = vld [vmem:[%s492_s1 + $0x80] sm:$0xf]  ;;  %v36_v31 = vld [vmem:[%s492_s1 + $0x90] sm:$0xf]  ;;  %44 = vperm.xlu0 %316, %v38_v28   ;;  %v41_v34 = vld [vmem:[%s493_s2 + $0x18] sm:$0x7] }
   0x9   :  { %v14_v32 = vld [vmem:[%s494_s0] sm:$0xff]  ;;  %54 = vperm.xlu1 %317, %v40_v29   ;;  %v15_v35 = vld [vmem:[%s494_s0 + $0x8] sm:$0xff]  ;;  %v16_v36 = vld [vmem:[%s494_s0 + $0x10] sm:$0xff] }
   0xa   :  { %305 = vmatpush1.bf16.msra.mxu0 %v304_v23  ;;  %v17_v37 = vld [vmem:[%s494_s0 + $0x18] sm:$0x7] }
   0xb   :  { %313 = vmatpush1.bf16.msra.mxu1 %v312_v25  ;;  %286 = vmatprep.subr.msk.mxu0 %vm75_vm0, %v35_v26 }
   0xc   :  { %292 = vmatprep.subr.msk.mxu1 %vm75_vm0, %v37_v27  ;;  %49 = vperm.xlu0 %316, %v39_v33  }
   0xd   :  { %59 = vperm.xlu1 %317, %v41_v34  }
   0xe   :  { %287 = vmatpush1.msk.msra.mxu0 %vm75_vm0, %v34_v30 }
   0xf   :  { %293 = vmatpush1.msk.msra.mxu1 %vm75_vm0, %v36_v31  ;;  %288 = vmatmul.mubr.msk.f32.vlgmr.msra.gmra.mrb[0].mxu0 %vm62_vm1, %v14_v32 }
  0x10   :  { %294 = vmatmul.mubr.msk.f32.vlgmr.msra.gmra.mrb[0].mxu1 %vm62_vm1, %v14_v32  ;;  %158 = vmatprep.mubr.f32.mxu0 %v318_v3 }
  0x11   :  { %247 = vmatprep.mubr.f32.mxu1 %v318_v3 }
  0x13   :  { %289 = vmatmul.mubr.msk.f32.gmra.mrb[2].mxu0 %vm62_vm1, %v15_v35 }
  0x14   :  { %295 = vmatmul.mubr.msk.f32.gmra.mrb[2].mxu1 %vm62_vm1, %v15_v35  ;;  %164 = vmatprep.mubr.f32.mxu0 %v318_v3 }
  0x15   :  { %253 = vmatprep.mubr.f32.mxu1 %v318_v3 }
  0x17   :  { %290 = vmatmul.mubr.msk.f32.gmra.mrb[4].mxu0 %vm62_vm1, %v16_v36 }
  0x18   :  { %296 = vmatmul.mubr.msk.f32.gmra.mrb[4].mxu1 %vm62_vm1, %v16_v36  ;;  %170 = vmatprep.mubr.f32.mxu0 %v318_v3 }
  0x19   :  { %259 = vmatprep.mubr.f32.mxu1 %v318_v3 }
  0x1b   :  { %291 = vmatmul.mubr.msk.f32.gmra.mrb[6].mxu0 %vm62_vm1, %v17_v37 }
  0x1c   :  { %297 = vmatmul.mubr.msk.f32.gmra.mrb[6].mxu1 %vm62_vm1, %v17_v37 }
  0x87   :  { %v45_v38 = vpop.permute.xlu0 %44 }
  0x88   :  { %v55_v53 = vpop.permute.xlu1 %54 }
  0x8b   :  { %v50_v46 = vpop.permute.xlu0 %49 }
  0x8c   :  { %v60_v1 = vpop.permute.xlu1 %59 }
  0xe2   :  { %v154_v39 = vpop.f32.mrb[0].mxu0 }
  0xe3   :  { %v155_v40 = vadd.f32 %v154_v39, %v45_v38  ;;  %v243_v41 = vpop.f32.mrb[0].mxu1  ;;  %v156_v42 = vpop.f32.mrb[1].mxu0 }
  0xe4   :  { %v244_v43 = vadd.f32 %v243_v41, %v45_v38  ;;  %v157_v44 = vadd.f32 %v156_v42, %v45_v38  ;;  %v245_v45 = vpop.f32.mrb[1].mxu1 }
  0xe5   :  { %266 = vst [vmem:[%s495_s3] sm:$0xff] %v155_v40  ;;  %v246_v47 = vadd.f32 %v245_v45, %v45_v38 }
  0xe6   :  { %268 = vst [vmem:[%s495_s3 + $0x10] sm:$0xff] %v244_v43  ;;  %267 = vst [vmem:[%s495_s3 + $0x8] sm:$0xff] %v157_v44  ;;  %v160_v48 = vpop.f32.mrb[2].mxu0 }
  0xe7   :  { %269 = vst [vmem:[%s495_s3 + $0x18] sm:$0xff] %v246_v47  ;;  %v161_v49 = vadd.f32 %v160_v48, %v50_v46  ;;  %v249_v50 = vpop.f32.mrb[2].mxu1  ;;  %v162_v51 = vpop.f32.mrb[3].mxu0 }
  0xe8   :  { %v250_v52 = vadd.f32 %v249_v50, %v50_v46  ;;  %v163_v54 = vadd.f32 %v162_v51, %v50_v46  ;;  %v251_v55 = vpop.f32.mrb[3].mxu1 }
  0xe9   :  { %270 = vst [vmem:[%s495_s3 + $0x20] sm:$0xff] %v161_v49  ;;  %v252_v56 = vadd.f32 %v251_v55, %v50_v46 }
  0xea   :  { %272 = vst [vmem:[%s495_s3 + $0x30] sm:$0xff] %v250_v52  ;;  %271 = vst [vmem:[%s495_s3 + $0x28] sm:$0xff] %v163_v54  ;;  %v166_v57 = vpop.f32.mrb[4].mxu0 }
  0xeb   :  { %273 = vst [vmem:[%s495_s3 + $0x38] sm:$0xff] %v252_v56  ;;  %v167_v58 = vadd.f32 %v166_v57, %v55_v53  ;;  %v255_v59 = vpop.f32.mrb[4].mxu1  ;;  %v168_v60 = vpop.f32.mrb[5].mxu0 }
  0xec   :  { %v256_v61 = vadd.f32 %v255_v59, %v55_v53  ;;  %v169_v62 = vadd.f32 %v168_v60, %v55_v53  ;;  %v257_v63 = vpop.f32.mrb[5].mxu1 }
  0xed   :  { %274 = vst [vmem:[%s495_s3 + $0x40] sm:$0xff] %v167_v58  ;;  %v258_v0 = vadd.f32 %v257_v63, %v55_v53 }
  0xee   :  { %276 = vst [vmem:[%s495_s3 + $0x50] sm:$0xff] %v256_v61  ;;  %275 = vst [vmem:[%s495_s3 + $0x48] sm:$0xff] %v169_v62  ;;  %v172_v2 = vpop.f32.mrb[6].mxu0 }
  0xef   :  { %277 = vst [vmem:[%s495_s3 + $0x58] sm:$0xff] %v258_v0  ;;  %v173_v3 = vadd.f32 %v172_v2, %v60_v1  ;;  %v261_v4 = vpop.f32.mrb[6].mxu1  ;;  %v174_v5 = vpop.f32.mrb[7].mxu0 }
  0xf0   :  { %v262_v6 = vadd.f32 %v261_v4, %v60_v1  ;;  %v175_v7 = vadd.f32 %v174_v5, %v60_v1  ;;  %v263_v8 = vpop.f32.mrb[7].mxu1 }
  0xf1   :  { %278 = vst [vmem:[%s495_s3 + $0x60] sm:$0x7] %v173_v3  ;;  %v264_v9 = vadd.f32 %v263_v8, %v60_v1 }
  0xf2   :  { %280 = vst [vmem:[%s495_s3 + $0x70] sm:$0x7] %v262_v6  ;;  %279 = vst [vmem:[%s495_s3 + $0x68] sm:$0x7] %v175_v7 }
  0xf3   :  { %281 = vst [vmem:[%s495_s3 + $0x78] sm:$0x7] %v264_v9 }

// kernel: dconv_forward.4
= control target key start
LH: loop header
LB: loop body
LE: loop exit
PB: predicated region body
PF: predicated region fallthrough
CT: control target
= control target key end

     0   :  { %s1662_s4 = inlined_call_operand.vmem [shape: f32[9,512], index: 4, kind: input, shape index: {}]   ;;  %s1663_s5 = inlined_call_operand.vmem [shape: f32[9,512], index: 5, kind: input, shape index: {}]   ;;  %s1664_s6 = inlined_call_operand.vmem [shape: f32[9,512], index: 6, kind: input, shape index: {}]   ;;  %s1665_s0 = inlined_call_operand.vmem [shape: f32[4,9,512], index: 0, kind: input, shape index: {}]   ;;  %s1666_s1 = inlined_call_operand.vmem [shape: f32[4,9,512], index: 1, kind: input, shape index: {}]   ;;  %s1667_s2 = inlined_call_operand.vmem [shape: f32[4,9,512], index: 2, kind: input, shape index: {}]   ;;  %s1668_s3 = inlined_call_operand.vmem [shape: f32[4,9,512], index: 3, kind: input, shape index: {}]   ;;  %s1669_s7 = inlined_call_operand.vmem [shape: f32[4,9,512], index: 7, kind: output, shape index: {}]  }
   0x1   :  { %v26_v0 = vld [vmem:[%s1662_s4] sm:$0xff]  ;;  %v27_v8 = vld [vmem:[%s1662_s4 + $0x8] sm:$0xff]  ;;  %v28_v38 = vld [vmem:[%s1662_s4 + $0x10] sm:$0xff] }
   0x2   :  { %v34_v1 = vld [vmem:[%s1663_s5] sm:$0xff]  ;;  %v42_v3 = vfloor.f32 %v26_v0  ;;  %v138_v5 = vmax.f32 %v26_v0, 0.0  ;;  %v35_v13 = vld [vmem:[%s1663_s5 + $0x8] sm:$0xff]  ;;  %v43_v17 = vfloor.f32 %v27_v8  ;;  %v139_v42 = vmax.f32 %v27_v8, 0.0  ;;  %v36_v47 = vld [vmem:[%s1663_s5 + $0x10] sm:$0xff] }
   0x3   :  { %v170_v2 = vld [vmem:[%s1664_s6] sm:$0xff]  ;;  %v50_v4 = vfloor.f32 %v34_v1  ;;  %v154_v6 = vmax.f32 %v34_v1, 0.0  ;;  %v51_v22 = vfloor.f32 %v35_v13  ;;  %v171_v37 = vld [vmem:[%s1664_s6 + $0x8] sm:$0xff]  ;;  %v155_v46 = vmax.f32 %v35_v13, 0.0  ;;  %v172_v8 = vld [vmem:[%s1664_s6 + $0x10] sm:$0xff] }
   0x4   :  { %v178_v7 = vsub.f32 0.0, %v170_v2  ;;  %v58_v9 = vmax.f32 %v42_v3, 0.0  ;;  %v90_v11 = vadd.f32 1.0, %v42_v3  ;;  %v146_v14 = vmin.f32 %v138_v5, 17.0  ;;  %v29_v13 = vld [vmem:[%s1662_s4 + $0x18] sm:$0xff] }
   0x5   :  { %v74_v10 = vmax.f32 %v50_v4, 0.0  ;;  %v114_v12 = vadd.f32 1.0, %v50_v4  ;;  %v162_v15 = vmin.f32 %v154_v6, 17.0  ;;  %v59_v23 = vmax.f32 %v43_v17, 0.0 }
   0x6   :  { %v186_v16 = vmul.f32 1.442695, %v178_v7  ;;  %v66_v18 = vmin.f32 %v58_v9, 17.0  ;;  %v98_v20 = vmax.f32 %v90_v11, 0.0  ;;  %v91_v24 = vadd.f32 1.0, %v43_v17 }
   0x7   :  { %v82_v19 = vmin.f32 %v74_v10, 17.0  ;;  %v122_v21 = vmax.f32 %v114_v12, 0.0  ;;  %v67_v29 = vmin.f32 %v59_v23, 17.0  ;;  %v75_v30 = vmax.f32 %v51_v22, 0.0 }
   0x8   :  { %742 = vpow2.f32 %v186_v16  ;;  %v106_v25 = vmin.f32 %v98_v20, 17.0  ;;  %v226_v27 = vsub.f32 %v66_v18, %v146_v14  ;;  %v99_v31 = vmax.f32 %v91_v24, 0.0 }
   0x9   :  { %v130_v26 = vmin.f32 %v122_v21, 17.0  ;;  %v242_v28 = vsub.f32 %v82_v19, %v162_v15  ;;  %v115_v32 = vadd.f32 1.0, %v51_v22  ;;  %v83_v39 = vmin.f32 %v75_v30, 17.0 }
   0xa   :  { %v234_v33 = vadd.f32 1.0, %v226_v27  ;;  %v274_v35 = vsub.f32 %v106_v25, %v146_v14  ;;  %v107_v40 = vmin.f32 %v99_v31, 17.0  ;;  %v147_v49 = vmin.f32 %v139_v42, 17.0  ;;  %v37_v14 = vld [vmem:[%s1663_s5 + $0x18] sm:$0xff] }
   0xb   :  { %v250_v34 = vadd.f32 1.0, %v242_v28  ;;  %v290_v36 = vsub.f32 %v130_v26, %v162_v15  ;;  %v123_v41 = vmax.f32 %v115_v32, 0.0  ;;  %v179_v50 = vsub.f32 0.0, %v171_v37 }
   0xc   :  { %v282_v44 = vsub.f32 1.0, %v274_v35  ;;  %v44_v51 = vfloor.f32 %v28_v38  ;;  %v163_v55 = vmin.f32 %v155_v46, 17.0  ;;  %v227_v57 = vsub.f32 %v67_v29, %v147_v49 }
   0xd   :  { %v835_v43 = vmul.f32 %v250_v34, %v234_v33  ;;  %v298_v45 = vsub.f32 1.0, %v290_v36  ;;  %v131_v48 = vmin.f32 %v123_v41, 17.0  ;;  %v188_v56 = vmul.f32 1.442695, %v179_v50  ;;  %v173_v41 = vld [vmem:[%s1664_s6 + $0x18] sm:$0xff] }
   0xe   :  { %v844_v54 = vmul.f32 %v282_v44, %v250_v34  ;;  %v275_v58 = vsub.f32 %v107_v40, %v147_v49  ;;  %v52_v59 = vfloor.f32 %v36_v47  ;;  %v243_v60 = vsub.f32 %v83_v39, %v163_v55 }
   0xf   :  { %v840_v52 = vmul.f32 %v298_v45, %v282_v44  ;;  %v842_v53 = vmul.f32 %v298_v45, %v234_v33  ;;  %v291_v61 = vsub.f32 %v131_v48, %v163_v55  ;;  %v60_v62 = vmax.f32 %v44_v51, 0.0  ;;  %v354_v55 = vld [vmem:[%s1665_s0] sm:$0xff] }
  0x10   :  { %v92_v63 = vadd.f32 1.0, %v44_v51  ;;  %744 = vpow2.f32 %v188_v56  ;;  %v235_v1 = vadd.f32 1.0, %v227_v57  ;;  %v283_v2 = vsub.f32 1.0, %v275_v58 }
  0x11   :  { %v76_v3 = vmax.f32 %v52_v59, 0.0  ;;  %v251_v5 = vadd.f32 1.0, %v243_v60  ;;  %v299_v6 = vsub.f32 1.0, %v291_v61  ;;  %v68_v7 = vmin.f32 %v60_v62, 17.0  ;;  %v418_v61 = vld [vmem:[%s1666_s1] sm:$0xff] }
  0x12   :  { %v743_v0 = vpop.eup %742  ;;  %v100_v10 = vmax.f32 %v92_v63, 0.0  ;;  %v116_v11 = vadd.f32 1.0, %v52_v59  ;;  %v140_v12 = vmax.f32 %v28_v38, 0.0  ;;  %v156_v22 = vmax.f32 %v36_v47, 0.0  ;;  %v514_v62 = vld [vmem:[%s1667_s2] sm:$0xff] }
  0x13   :  { %v202_v4 = vadd.f32 1.0, %v743_v0  ;;  %v84_v9 = vmin.f32 %v76_v3, 17.0  ;;  %v855_v15 = vmul.f32 %v251_v5, %v235_v1  ;;  %v857_v16 = vmul.f32 %v299_v6, %v283_v2  ;;  %v610_v63 = vld [vmem:[%s1668_s3] sm:$0xff] }
  0x14   :  { %v859_v17 = vmul.f32 %v299_v6, %v235_v1  ;;  %v861_v18 = vmul.f32 %v283_v2, %v251_v5  ;;  %v108_v19 = vmin.f32 %v100_v10, 17.0  ;;  %v124_v20 = vmax.f32 %v116_v11, 0.0 }
  0x15   :  { %746 = vrcp.f32 %v202_v4  ;;  %v148_v21 = vmin.f32 %v140_v12, 17.0  ;;  %v180_v23 = vsub.f32 0.0, %v172_v8  ;;  %v45_v24 = vfloor.f32 %v29_v13 }
  0x16   :  { %v53_v25 = vfloor.f32 %v37_v14  ;;  %v132_v26 = vmin.f32 %v124_v20, 17.0  ;;  %v141_v29 = vmax.f32 %v29_v13, 0.0  ;;  %v164_v30 = vmin.f32 %v156_v22, 17.0 }
  0x17   :  { %v228_v27 = vsub.f32 %v68_v7, %v148_v21  ;;  %v276_v28 = vsub.f32 %v108_v19, %v148_v21  ;;  %v190_v31 = vmul.f32 1.442695, %v180_v23  ;;  %v61_v32 = vmax.f32 %v45_v24, 0.0  ;;  %v30_v7 = vld [vmem:[%s1662_s4 + $0x20] sm:$0x1] }
  0x18   :  { %v77_v33 = vmax.f32 %v53_v25, 0.0  ;;  %v93_v36 = vadd.f32 1.0, %v45_v24  ;;  %v117_v37 = vadd.f32 1.0, %v53_v25  ;;  %v244_v38 = vsub.f32 %v84_v9, %v164_v30 }
  0x19   :  { %v236_v34 = vadd.f32 1.0, %v228_v27  ;;  %v284_v35 = vsub.f32 1.0, %v276_v28  ;;  %748 = vpow2.f32 %v190_v31  ;;  %v292_v39 = vsub.f32 %v132_v26, %v164_v30 }
  0x1a   :  { %v69_v40 = vmin.f32 %v61_v32, 17.0  ;;  %v745_v42 = vpop.eup %744  ;;  %v85_v44 = vmin.f32 %v77_v33, 17.0  ;;  %v101_v45 = vmax.f32 %v93_v36, 0.0  ;;  %v125_v46 = vmax.f32 %v117_v37, 0.0 }
  0x1b   :  { %v149_v47 = vmin.f32 %v141_v29, 17.0  ;;  %v203_v48 = vadd.f32 1.0, %v745_v42  ;;  %v252_v49 = vadd.f32 1.0, %v244_v38  ;;  %v300_v50 = vsub.f32 1.0, %v292_v39  ;;  %v355_v38 = vld [vmem:[%s1665_s0 + $0x8] sm:$0xff] }
  0x1c   :  { %v157_v51 = vmax.f32 %v37_v14, 0.0  ;;  %v109_v56 = vmin.f32 %v101_v45, 17.0  ;;  %v133_v57 = vmin.f32 %v125_v46, 17.0  ;;  %v181_v58 = vsub.f32 0.0, %v173_v41  ;;  %v419_v39 = vld [vmem:[%s1666_s1 + $0x8] sm:$0xff] }
  0x1d   :  { %v229_v59 = vsub.f32 %v69_v40, %v149_v47  ;;  %750 = vrcp.f32 %v203_v48  ;;  %v878_v0 = vmul.f32 %v252_v49, %v236_v34  ;;  %v880_v1 = vmul.f32 %v300_v50, %v284_v35  ;;  %v174_v42 = vld [vmem:[%s1664_s6 + $0x20] sm:$0x1]  ;;  %v515_v45 = vld [vmem:[%s1667_s2 + $0x8] sm:$0xff] }
  0x1e   :  { %v882_v2 = vmul.f32 %v300_v50, %v236_v34  ;;  %v899_v8 = vmul.f32 %v284_v35, %v252_v49  ;;  %v165_v9 = vmin.f32 %v157_v51, 17.0  ;;  %v192_v10 = vmul.f32 1.442695, %v181_v58  ;;  %v611_v46 = vld [vmem:[%s1668_s3 + $0x8] sm:$0xff] }
  0x1f   :  { %v747_v60 = vpop.eup %746  ;;  %v237_v11 = vadd.f32 1.0, %v229_v59  ;;  %v277_v14 = vsub.f32 %v109_v56, %v149_v47  ;;  %v46_v21 = vfloor.f32 %v30_v7  ;;  %v142_v23 = vmax.f32 %v30_v7, 0.0 }
  0x20   :  { %v885_v3 = vmul.f32 %v747_v60, %v835_v43  ;;  %v888_v4 = vmul.f32 %v747_v60, %v840_v52  ;;  %v891_v5 = vmul.f32 %v747_v60, %v842_v53  ;;  %v894_v6 = vmul.f32 %v747_v60, %v844_v54  ;;  %v38_v43 = vld [vmem:[%s1663_s5 + $0x20] sm:$0x1] }
  0x21   :  { %752 = vpow2.f32 %v192_v10  ;;  %v245_v13 = vsub.f32 %v85_v44, %v165_v9  ;;  %v293_v19 = vsub.f32 %v133_v57, %v165_v9  ;;  %v54_v22 = vfloor.f32 %v38_v43 }
  0x22   :  { %v386_v52 = vmul.f32 %v354_v55, %v885_v3  ;;  %v450_v53 = vmul.f32 %v418_v61, %v888_v4  ;;  %v546_v54 = vmul.f32 %v514_v62, %v891_v5  ;;  %v642_v12 = vmul.f32 %v610_v63, %v894_v6  ;;  %v31_v62 = vld [vmem:[%s1662_s4 + $0x28] sm:$0x1] }
  0x23   :  { %v749_v24 = vpop.eup %748  ;;  %v253_v25 = vadd.f32 1.0, %v245_v13  ;;  %v285_v26 = vsub.f32 1.0, %v277_v14  ;;  %v301_v27 = vsub.f32 1.0, %v293_v19  ;;  %v158_v28 = vmax.f32 %v38_v43, 0.0 }
  0x24   :  { %v482_v20 = vadd.f32 %v450_v53, %v386_v52  ;;  %v204_v30 = vadd.f32 1.0, %v749_v24  ;;  %v62_v31 = vmax.f32 %v46_v21, 0.0  ;;  %v78_v32 = vmax.f32 %v54_v22, 0.0 }
  0x25   :  { %v908_v33 = vmul.f32 %v253_v25, %v237_v11  ;;  %v910_v34 = vmul.f32 %v301_v27, %v285_v26  ;;  %v912_v35 = vmul.f32 %v301_v27, %v237_v11  ;;  %v914_v36 = vmul.f32 %v285_v26, %v253_v25 }
  0x26   :  { %v578_v29 = vadd.f32 %v546_v54, %v482_v20  ;;  %754 = vrcp.f32 %v204_v30  ;;  %v70_v40 = vmin.f32 %v62_v31, 17.0  ;;  %v86_v41 = vmin.f32 %v78_v32, 17.0  ;;  %v420_v30 = vld [vmem:[%s1666_s1 + $0x10] sm:$0xff] }
  0x27   :  { %v751_v44 = vpop.eup %750  ;;  %v94_v47 = vadd.f32 1.0, %v46_v21  ;;  %v118_v48 = vadd.f32 1.0, %v54_v22  ;;  %v150_v49 = vmin.f32 %v142_v23, 17.0  ;;  %v166_v50 = vmin.f32 %v158_v28, 17.0  ;;  %v356_v23 = vld [vmem:[%s1665_s0 + $0x10] sm:$0xff] }
  0x28   :  { %v674_v37 = vadd.f32 %v642_v12, %v578_v29  ;;  %v935_v51 = vmul.f32 %v751_v44, %v855_v15  ;;  %v938_v55 = vmul.f32 %v751_v44, %v857_v16  ;;  %v941_v56 = vmul.f32 %v751_v44, %v859_v17  ;;  %v516_v31 = vld [vmem:[%s1667_s2 + $0x10] sm:$0xff] }
  0x29   :  { %v944_v57 = vmul.f32 %v751_v44, %v861_v18  ;;  %v102_v58 = vmax.f32 %v94_v47, 0.0  ;;  %v126_v59 = vmax.f32 %v118_v48, 0.0  ;;  %v182_v60 = vsub.f32 0.0, %v174_v42  ;;  %v39_v18 = vld [vmem:[%s1663_s5 + $0x28] sm:$0x1]  ;;  %v612_v32 = vld [vmem:[%s1668_s3 + $0x10] sm:$0xff] }
  0x2a   :  { %706 = vst [vmem:[%s1669_s7] sm:$0xff] %v674_v37  ;;  %v230_v61 = vsub.f32 %v70_v40, %v150_v49  ;;  %v387_v15 = vmul.f32 %v355_v38, %v935_v51  ;;  %v451_v63 = vmul.f32 %v419_v39, %v938_v55  ;;  %v547_v16 = vmul.f32 %v515_v45, %v941_v56  ;;  %v175_v45 = vld [vmem:[%s1664_s6 + $0x28] sm:$0x1] }
  0x2b   :  { %v643_v17 = vmul.f32 %v611_v46, %v944_v57  ;;  %v753_v7 = vpop.eup %752  ;;  %v110_v9 = vmin.f32 %v102_v58, 17.0  ;;  %v134_v10 = vmin.f32 %v126_v59, 17.0  ;;  %v194_v11 = vmul.f32 1.442695, %v182_v60 }
  0x2c   :  { %v238_v43 = vadd.f32 1.0, %v230_v61  ;;  %v483_v52 = vadd.f32 %v451_v63, %v387_v15  ;;  %v205_v53 = vadd.f32 1.0, %v753_v7  ;;  %v246_v54 = vsub.f32 %v86_v41, %v166_v50 }
  0x2d   :  { %v47_v12 = vfloor.f32 %v31_v62  ;;  %756 = vpow2.f32 %v194_v11  ;;  %v278_v13 = vsub.f32 %v110_v9, %v150_v49  ;;  %v294_v14 = vsub.f32 %v134_v10, %v166_v50 }
  0x2e   :  { %v55_v19 = vfloor.f32 %v39_v18  ;;  %v579_v20 = vadd.f32 %v547_v16, %v483_v52  ;;  %758 = vrcp.f32 %v205_v53  ;;  %v254_v21 = vadd.f32 1.0, %v246_v54 }
  0x2f   :  { %v63_v22 = vmax.f32 %v47_v12, 0.0  ;;  %v286_v24 = vsub.f32 1.0, %v278_v13  ;;  %v302_v25 = vsub.f32 1.0, %v294_v14  ;;  %v95_v27 = vadd.f32 1.0, %v47_v12 }
  0x30   :  { %v79_v26 = vmax.f32 %v55_v19, 0.0  ;;  %v755_v28 = vpop.eup %754  ;;  %v675_v29 = vadd.f32 %v643_v17, %v579_v20  ;;  %v968_v37 = vmul.f32 %v254_v21, %v238_v43  ;;  %v119_v39 = vadd.f32 1.0, %v55_v19  ;;  %v517_v19 = vld [vmem:[%s1667_s2 + $0x18] sm:$0xff] }
  0x31   :  { %v71_v38 = vmin.f32 %v63_v22, 17.0  ;;  %v971_v40 = vmul.f32 %v755_v28, %v878_v0  ;;  %v974_v41 = vmul.f32 %v755_v28, %v880_v1  ;;  %v977_v42 = vmul.f32 %v755_v28, %v882_v2  ;;  %v997_v2 = vld [vmem:[%s1662_s4 + $0x30] sm:$0x1] }
  0x32   :  { %v980_v44 = vmul.f32 %v755_v28, %v899_v8  ;;  %707 = vst [vmem:[%s1669_s7 + $0x8] sm:$0xff] %v675_v29  ;;  %v988_v46 = vmul.f32 %v302_v25, %v286_v24  ;;  %v990_v0 = vmul.f32 %v302_v25, %v238_v43  ;;  %v992_v1 = vmul.f32 %v286_v24, %v254_v21  ;;  %v1002_v8 = vld [vmem:[%s1663_s5 + $0x30] sm:$0x1]  ;;  %v613_v28 = vld [vmem:[%s1668_s3 + $0x18] sm:$0xff] }
  0x33   :  { %v87_v47 = vmin.f32 %v79_v26, 17.0  ;;  %v388_v48 = vmul.f32 %v356_v23, %v971_v40  ;;  %v452_v49 = vmul.f32 %v420_v30, %v974_v41  ;;  %v548_v50 = vmul.f32 %v516_v31, %v977_v42 }
  0x34   :  { %v644_v58 = vmul.f32 %v612_v32, %v980_v44  ;;  %v103_v59 = vmax.f32 %v95_v27, 0.0  ;;  %v127_v60 = vmax.f32 %v119_v39, 0.0  ;;  %v143_v61 = vmax.f32 %v31_v62, 0.0  ;;  %v357_v62 = vld [vmem:[%s1665_s0 + $0x18] sm:$0xff] }
  0x35   :  { %v159_v15 = vmax.f32 %v39_v18, 0.0  ;;  %v484_v63 = vadd.f32 %v452_v49, %v388_v48  ;;  %v183_v16 = vsub.f32 0.0, %v175_v45  ;;  %v48_v17 = vfloor.f32 %v997_v2  ;;  %v421_v18 = vld [vmem:[%s1666_s1 + $0x18] sm:$0xff]  ;;  %v176_v45 = vld [vmem:[%s1664_s6 + $0x30] sm:$0x1] }
  0x36   :  { %v56_v7 = vfloor.f32 %v1002_v8  ;;  %v111_v9 = vmin.f32 %v103_v59, 17.0  ;;  %v135_v10 = vmin.f32 %v127_v60, 17.0  ;;  %v151_v11 = vmin.f32 %v143_v61, 17.0 }
  0x37   :  { %v167_v43 = vmin.f32 %v159_v15, 17.0  ;;  %v757_v52 = vpop.eup %756  ;;  %v580_v53 = vadd.f32 %v548_v50, %v484_v63  ;;  %v196_v54 = vmul.f32 1.442695, %v183_v16  ;;  %v64_v12 = vmax.f32 %v48_v17, 0.0  ;;  %v33_v15 = vld [vmem:[%s1662_s4 + $0x38] sm:$0x1] }
  0x38   :  { %v80_v13 = vmax.f32 %v56_v7, 0.0  ;;  %v759_v14 = vpop.eup %758  ;;  %v206_v20 = vadd.f32 1.0, %v757_v52  ;;  %v231_v21 = vsub.f32 %v71_v38, %v151_v11  ;;  %v279_v23 = vsub.f32 %v111_v9, %v151_v11  ;;  %v41_v11 = vld [vmem:[%s1663_s5 + $0x38] sm:$0x1] }
  0x39   :  { %v247_v22 = vsub.f32 %v87_v47, %v167_v43  ;;  %v676_v24 = vadd.f32 %v644_v58, %v580_v53  ;;  %v1020_v25 = vmul.f32 %v759_v14, %v908_v33  ;;  %v1023_v26 = vmul.f32 %v759_v14, %v910_v34 }
  0x3a   :  { %v1026_v27 = vmul.f32 %v759_v14, %v912_v35  ;;  %v1032_v29 = vmul.f32 %v759_v14, %v914_v36  ;;  %760 = vrcp.f32 %v206_v20  ;;  %v239_v30 = vadd.f32 1.0, %v231_v21  ;;  %v518_v20 = vld [vmem:[%s1667_s2 + $0x20] sm:$0x1] }
  0x3b   :  { %v255_v31 = vadd.f32 1.0, %v247_v22  ;;  %708 = vst [vmem:[%s1669_s7 + $0x10] sm:$0xff] %v676_v24  ;;  %v389_v33 = vmul.f32 %v357_v62, %v1020_v25  ;;  %v453_v34 = vmul.f32 %v421_v18, %v1023_v26  ;;  %762 = vpow2.f32 %v196_v54 }
  0x3c   :  { %v549_v35 = vmul.f32 %v517_v19, %v1026_v27  ;;  %v645_v32 = vmul.f32 %v613_v28, %v1032_v29  ;;  %v287_v36 = vsub.f32 1.0, %v279_v23  ;;  %v295_v39 = vsub.f32 %v135_v10, %v167_v43  ;;  %v422_v19 = vld [vmem:[%s1666_s1 + $0x20] sm:$0x1] }
  0x3d   :  { %v1041_v38 = vmul.f32 %v255_v31, %v239_v30  ;;  %v485_v47 = vadd.f32 %v453_v34, %v389_v33  ;;  %v72_v48 = vmin.f32 %v64_v12, 17.0  ;;  %v88_v49 = vmin.f32 %v80_v13, 17.0  ;;  %v358_v13 = vld [vmem:[%s1665_s0 + $0x20] sm:$0x1] }
  0x3e   :  { %v96_v50 = vadd.f32 1.0, %v48_v17  ;;  %v303_v58 = vsub.f32 1.0, %v295_v39  ;;  %v1046_v59 = vmul.f32 %v287_v36, %v255_v31  ;;  %v120_v60 = vadd.f32 1.0, %v56_v7  ;;  %v614_v28 = vld [vmem:[%s1668_s3 + $0x20] sm:$0x1] }
  0x3f   :  { %v144_v61 = vmax.f32 %v997_v2, 0.0  ;;  %v581_v63 = vadd.f32 %v549_v35, %v485_v47  ;;  %v160_v9 = vmax.f32 %v1002_v8, 0.0  ;;  %v184_v10 = vsub.f32 0.0, %v176_v45 }
  0x40   :  { %v104_v16 = vmax.f32 %v96_v50, 0.0  ;;  %v1056_v17 = vmul.f32 %v303_v58, %v287_v36  ;;  %v1058_v43 = vmul.f32 %v303_v58, %v239_v30  ;;  %v128_v7 = vmax.f32 %v120_v60, 0.0 }
  0x41   :  { %v152_v52 = vmin.f32 %v144_v61, 17.0  ;;  %v677_v2 = vadd.f32 %v645_v32, %v581_v63  ;;  %v168_v54 = vmin.f32 %v160_v9, 17.0  ;;  %v198_v12 = vmul.f32 1.442695, %v184_v10  ;;  %v362_v63 = vld [vmem:[%s1665_s0 + $0x40] sm:$0xff] }
  0x42   :  { %v112_v53 = vmin.f32 %v104_v16, 17.0  ;;  %v136_v8 = vmin.f32 %v128_v7, 17.0  ;;  %v49_v62 = vfloor.f32 %v33_v15  ;;  %v57_v18 = vfloor.f32 %v41_v11  ;;  %v426_v16 = vld [vmem:[%s1666_s1 + $0x40] sm:$0xff] }
  0x43   :  { %v232_v14 = vsub.f32 %v72_v48, %v152_v52  ;;  %709 = vst [vmem:[%s1669_s7 + $0x18] sm:$0xff] %v677_v2  ;;  %764 = vpow2.f32 %v198_v12  ;;  %v248_v21 = vsub.f32 %v88_v49, %v168_v54  ;;  %v145_v23 = vmax.f32 %v33_v15, 0.0 }
  0x44   :  { %v280_v22 = vsub.f32 %v112_v53, %v152_v52  ;;  %v761_v24 = vpop.eup %760  ;;  %v296_v31 = vsub.f32 %v136_v8, %v168_v54  ;;  %v65_v33 = vmax.f32 %v49_v62, 0.0  ;;  %v81_v34 = vmax.f32 %v57_v18, 0.0 }
  0x45   :  { %v240_v30 = vadd.f32 1.0, %v232_v14  ;;  %v763_v35 = vpop.eup %762  ;;  %v1076_v32 = vmul.f32 %v761_v24, %v968_v37  ;;  %v1079_v36 = vmul.f32 %v761_v24, %v988_v46  ;;  %v1082_v39 = vmul.f32 %v761_v24, %v990_v0 }
  0x46   :  { %v1085_v45 = vmul.f32 %v761_v24, %v992_v1  ;;  %v207_v47 = vadd.f32 1.0, %v763_v35  ;;  %v256_v48 = vadd.f32 1.0, %v248_v21  ;;  %v288_v49 = vsub.f32 1.0, %v280_v22  ;;  %v177_v1 = vld [vmem:[%s1664_s6 + $0x38] sm:$0x1] }
  0x47   :  { %v304_v50 = vsub.f32 1.0, %v296_v31  ;;  %v390_v58 = vmul.f32 %v358_v13, %v1076_v32  ;;  %v454_v60 = vmul.f32 %v422_v19, %v1079_v36  ;;  %v550_v37 = vmul.f32 %v518_v20, %v1082_v39  ;;  %v522_v13 = vld [vmem:[%s1667_s2 + $0x40] sm:$0xff] }
  0x48   :  { %v646_v61 = vmul.f32 %v614_v28, %v1085_v45  ;;  %766 = vrcp.f32 %v207_v47  ;;  %v1091_v46 = vmul.f32 %v256_v48, %v240_v30  ;;  %v1106_v10 = vmul.f32 %v288_v49, %v256_v48 }
  0x49   :  { %v1093_v0 = vmul.f32 %v304_v50, %v288_v49  ;;  %v1095_v15 = vmul.f32 %v304_v50, %v240_v30  ;;  %v486_v9 = vadd.f32 %v454_v60, %v390_v58  ;;  %v73_v7 = vmin.f32 %v65_v33, 17.0  ;;  %v363_v33 = vld [vmem:[%s1665_s0 + $0x48] sm:$0xff] }
  0x4a   :  { %v89_v52 = vmin.f32 %v81_v34, 17.0  ;;  %v97_v2 = vadd.f32 1.0, %v49_v62  ;;  %v121_v53 = vadd.f32 1.0, %v57_v18  ;;  %v153_v54 = vmin.f32 %v145_v23, 17.0  ;;  %v618_v62 = vld [vmem:[%s1668_s3 + $0x40] sm:$0xff]  ;;  %v427_v49 = vld [vmem:[%s1666_s1 + $0x48] sm:$0xff] }
  0x4b   :  { %v161_v12 = vmax.f32 %v41_v11, 0.0  ;;  %v582_v8 = vadd.f32 %v550_v37, %v486_v9  ;;  %v185_v14 = vsub.f32 0.0, %v177_v1  ;;  %v394_v19 = vmul.f32 %v362_v63, %v885_v3  ;;  %v523_v50 = vld [vmem:[%s1667_s2 + $0x48] sm:$0xff]  ;;  %v364_v1 = vld [vmem:[%s1665_s0 + $0x50] sm:$0xff] }
  0x4c   :  { %v458_v20 = vmul.f32 %v426_v16, %v888_v4  ;;  %v105_v21 = vmax.f32 %v97_v2, 0.0  ;;  %v129_v22 = vmax.f32 %v121_v53, 0.0  ;;  %v233_v28 = vsub.f32 %v73_v7, %v153_v54  ;;  %v359_v7 = vld [vmem:[%s1665_s0 + $0x28] sm:$0x1] }
  0x4d   :  { %v169_v24 = vmin.f32 %v161_v12, 17.0  ;;  %v765_v18 = vpop.eup %764  ;;  %v678_v11 = vadd.f32 %v646_v61, %v582_v8  ;;  %v200_v23 = vmul.f32 1.442695, %v185_v14  ;;  %v554_v31 = vmul.f32 %v522_v13, %v891_v5  ;;  %v619_v61 = vld [vmem:[%s1668_s3 + $0x48] sm:$0xff] }
  0x4e   :  { %v490_v30 = vadd.f32 %v458_v20, %v394_v19  ;;  %v208_v34 = vadd.f32 1.0, %v765_v18  ;;  %v113_v35 = vmin.f32 %v105_v21, 17.0  ;;  %v137_v47 = vmin.f32 %v129_v22, 17.0  ;;  %v615_v14 = vld [vmem:[%s1668_s3 + $0x28] sm:$0x1] }
  0x4f   :  { %v241_v48 = vadd.f32 1.0, %v233_v28  ;;  %710 = vst [vmem:[%s1669_s7 + $0x20] sm:$0x1] %v678_v11  ;;  %768 = vpow2.f32 %v200_v23  ;;  %v249_v58 = vsub.f32 %v89_v52, %v169_v24  ;;  %v650_v37 = vmul.f32 %v618_v62, %v894_v6  ;;  %v423_v52 = vld [vmem:[%s1666_s1 + $0x28] sm:$0x1]  ;;  %v428_v11 = vld [vmem:[%s1666_s1 + $0x50] sm:$0xff] }
  0x50   :  { %v586_v60 = vadd.f32 %v554_v31, %v490_v30  ;;  %770 = vrcp.f32 %v208_v34  ;;  %v281_v63 = vsub.f32 %v113_v35, %v153_v54  ;;  %v297_v16 = vsub.f32 %v137_v47, %v169_v24  ;;  %v519_v54 = vld [vmem:[%s1667_s2 + $0x28] sm:$0x1]  ;;  %v365_v31 = vld [vmem:[%s1665_s0 + $0x58] sm:$0xff] }
  0x51   :  { %v395_v9 = vmul.f32 %v363_v33, %v935_v51  ;;  %v257_v2 = vadd.f32 1.0, %v249_v58  ;;  %v459_v12 = vmul.f32 %v427_v49, %v938_v55  ;;  %v555_v13 = vmul.f32 %v523_v50, %v941_v56  ;;  %v429_v33 = vld [vmem:[%s1666_s1 + $0x58] sm:$0xff]  ;;  %v366_v58 = vld [vmem:[%s1665_s0 + $0x60] sm:$0x1] }
  0x52   :  { %v682_v53 = vadd.f32 %v650_v37, %v586_v60  ;;  %v767_v8 = vpop.eup %766  ;;  %v289_v19 = vsub.f32 1.0, %v281_v63  ;;  %v305_v20 = vsub.f32 1.0, %v297_v16  ;;  %v651_v21 = vmul.f32 %v619_v61, %v944_v57  ;;  %v525_v34 = vld [vmem:[%s1667_s2 + $0x58] sm:$0xff]  ;;  %v430_v63 = vld [vmem:[%s1666_s1 + $0x60] sm:$0x1] }
  0x53   :  { %v396_v22 = vmul.f32 %v364_v1, %v971_v40  ;;  %v1154_v24 = vmul.f32 %v767_v8, %v1041_v38  ;;  %v1157_v28 = vmul.f32 %v767_v8, %v1056_v17  ;;  %v1160_v62 = vmul.f32 %v767_v8, %v1058_v43  ;;  %v524_v38 = vld [vmem:[%s1667_s2 + $0x50] sm:$0xff]  ;;  %v621_v50 = vld [vmem:[%s1668_s3 + $0x58] sm:$0xff]  ;;  %v526_v16 = vld [vmem:[%s1667_s2 + $0x60] sm:$0x1] }
  0x54   :  { %v1163_v18 = vmul.f32 %v767_v8, %v1046_v59  ;;  %714 = vst [vmem:[%s1669_s7 + $0x40] sm:$0xff] %v682_v53  ;;  %v620_v17 = vld [vmem:[%s1668_s3 + $0x50] sm:$0xff]  ;;  %v1177_v43 = vmul.f32 %v257_v2, %v241_v48  ;;  %v1179_v59 = vmul.f32 %v305_v20, %v289_v19  ;;  %v1181_v23 = vmul.f32 %v305_v20, %v241_v48  ;;  %v622_v53 = vld [vmem:[%s1668_s3 + $0x60] sm:$0x1] }
  0x55   :  { %v1183_v30 = vmul.f32 %v289_v19, %v257_v2  ;;  %v391_v35 = vmul.f32 %v359_v7, %v1154_v24  ;;  %v455_v47 = vmul.f32 %v423_v52, %v1157_v28  ;;  %v551_v48 = vmul.f32 %v519_v54, %v1160_v62 }
  0x56   :  { %v647_v49 = vmul.f32 %v615_v14, %v1163_v18  ;;  %v491_v60 = vadd.f32 %v459_v12, %v395_v9  ;;  %v460_v37 = vmul.f32 %v428_v11, %v974_v41  ;;  %v556_v61 = vmul.f32 %v524_v38, %v977_v42  ;;  %v360_v11 = vld [vmem:[%s1665_s0 + $0x30] sm:$0x1] }
  0x57   :  { %v652_v1 = vmul.f32 %v620_v17, %v980_v44  ;;  %v487_v7 = vadd.f32 %v455_v47, %v391_v35  ;;  %v397_v52 = vmul.f32 %v365_v31, %v1020_v25  ;;  %v461_v2 = vmul.f32 %v429_v33, %v1023_v26 }
  0x58   :  { %v557_v9 = vmul.f32 %v525_v34, %v1026_v27  ;;  %v587_v12 = vadd.f32 %v555_v13, %v491_v60  ;;  %v492_v8 = vadd.f32 %v460_v37, %v396_v22  ;;  %v653_v54 = vmul.f32 %v621_v50, %v1032_v29  ;;  %v424_v13 = vld [vmem:[%s1666_s1 + $0x30] sm:$0x1] }
  0x59   :  { %v398_v14 = vmul.f32 %v366_v58, %v1076_v32  ;;  %v769_v19 = vpop.eup %768  ;;  %v583_v20 = vadd.f32 %v551_v48, %v487_v7  ;;  %v493_v38 = vadd.f32 %v461_v2, %v397_v52  ;;  %v462_v17 = vmul.f32 %v430_v63, %v1079_v36  ;;  %v520_v22 = vld [vmem:[%s1667_s2 + $0x30] sm:$0x1] }
  0x5a   :  { %v558_v31 = vmul.f32 %v526_v16, %v1082_v39  ;;  %v771_v33 = vpop.eup %770  ;;  %v209_v34 = vadd.f32 1.0, %v769_v19  ;;  %v683_v35 = vadd.f32 %v651_v21, %v587_v12  ;;  %v588_v47 = vadd.f32 %v556_v61, %v492_v8  ;;  %v616_v63 = vld [vmem:[%s1668_s3 + $0x30] sm:$0x1]  ;;  %v367_v21 = vld [vmem:[%s1665_s0 + $0x68] sm:$0x1] }
  0x5b   :  { %v654_v48 = vmul.f32 %v622_v53, %v1085_v45  ;;  %v679_v50 = vadd.f32 %v647_v49, %v583_v20  ;;  %v1234_v58 = vmul.f32 %v771_v33, %v1091_v46  ;;  %v1237_v60 = vmul.f32 %v771_v33, %v1093_v0  ;;  %v431_v49 = vld [vmem:[%s1666_s1 + $0x68] sm:$0x1]  ;;  %v368_v2 = vld [vmem:[%s1665_s0 + $0x70] sm:$0x1] }
  0x5c   :  { %v1240_v37 = vmul.f32 %v771_v33, %v1095_v15  ;;  %v1252_v46 = vmul.f32 %v771_v33, %v1106_v10  ;;  %772 = vrcp.f32 %v209_v34  ;;  %715 = vst [vmem:[%s1669_s7 + $0x48] sm:$0xff] %v683_v35  ;;  %v684_v0 = vadd.f32 %v652_v1, %v588_v47  ;;  %v527_v61 = vld [vmem:[%s1667_s2 + $0x68] sm:$0x1]  ;;  %v528_v53 = vld [vmem:[%s1667_s2 + $0x70] sm:$0x1] }
  0x5d   :  { %v589_v15 = vadd.f32 %v557_v9, %v493_v38  ;;  %v623_v16 = vld [vmem:[%s1668_s3 + $0x68] sm:$0x1]  ;;  %711 = vst [vmem:[%s1669_s7 + $0x28] sm:$0x1] %v679_v50  ;;  %v392_v10 = vmul.f32 %v360_v11, %v1234_v58  ;;  %v456_v7 = vmul.f32 %v424_v13, %v1237_v60  ;;  %v494_v1 = vadd.f32 %v462_v17, %v398_v14  ;;  %v432_v9 = vld [vmem:[%s1666_s1 + $0x70] sm:$0x1] }
  0x5e   :  { %v552_v52 = vmul.f32 %v520_v22, %v1240_v37  ;;  %v648_v12 = vmul.f32 %v616_v63, %v1252_v46  ;;  %716 = vst [vmem:[%s1669_s7 + $0x50] sm:$0xff] %v684_v0  ;;  %v399_v14 = vmul.f32 %v367_v21, %v1154_v24  ;;  %v463_v19 = vmul.f32 %v431_v49, %v1157_v28  ;;  %v624_v20 = vld [vmem:[%s1668_s3 + $0x70] sm:$0x1]  ;;  %v370_v11 = vld [vmem:[%s1665_s0 + $0x80] sm:$0xff]  ;;  %v371_v63 = vld [vmem:[%s1665_s0 + $0x88] sm:$0xff] }
  0x5f   :  { %v685_v8 = vadd.f32 %v653_v54, %v589_v15  ;;  %v488_v38 = vadd.f32 %v456_v7, %v392_v10  ;;  %v590_v17 = vadd.f32 %v558_v31, %v494_v1  ;;  %v559_v33 = vmul.f32 %v527_v61, %v1160_v62  ;;  %v434_v54 = vld [vmem:[%s1666_s1 + $0x80] sm:$0xff]  ;;  %v435_v21 = vld [vmem:[%s1666_s1 + $0x88] sm:$0xff] }
  0x60   :  { %v655_v13 = vmul.f32 %v623_v16, %v1163_v18  ;;  %v530_v22 = vld [vmem:[%s1667_s2 + $0x80] sm:$0xff]  ;;  %v495_v34 = vadd.f32 %v463_v19, %v399_v14  ;;  %v400_v35 = vmul.f32 %v368_v2, %v1234_v58  ;;  %v464_v31 = vmul.f32 %v432_v9, %v1237_v60  ;;  %v531_v16 = vld [vmem:[%s1667_s2 + $0x88] sm:$0xff] }
  0x61   :  { %717 = vst [vmem:[%s1669_s7 + $0x58] sm:$0xff] %v685_v8  ;;  %v560_v47 = vmul.f32 %v528_v53, %v1240_v37  ;;  %v626_v50 = vld [vmem:[%s1668_s3 + $0x80] sm:$0xff]  ;;  %v584_v49 = vadd.f32 %v552_v52, %v488_v38  ;;  %v686_v0 = vadd.f32 %v654_v48, %v590_v17  ;;  %v656_v15 = vmul.f32 %v624_v20, %v1252_v46  ;;  %v627_v9 = vld [vmem:[%s1668_s3 + $0x88] sm:$0xff]  ;;  %v372_v48 = vld [vmem:[%s1665_s0 + $0x90] sm:$0xff] }
  0x62   :  { %v402_v61 = vmul.f32 %v370_v11, %v885_v3  ;;  %v591_v10 = vadd.f32 %v559_v33, %v495_v34  ;;  %v496_v7 = vadd.f32 %v464_v31, %v400_v35  ;;  %v466_v1 = vmul.f32 %v434_v54, %v888_v4  ;;  %v436_v52 = vld [vmem:[%s1666_s1 + $0x90] sm:$0xff]  ;;  %v361_v54 = vld [vmem:[%s1665_s0 + $0x38] sm:$0x1] }
  0x63   :  { %v562_v2 = vmul.f32 %v530_v22, %v891_v5  ;;  %v680_v53 = vadd.f32 %v648_v12, %v584_v49  ;;  %718 = vst [vmem:[%s1669_s7 + $0x60] sm:$0x1] %v686_v0  ;;  %v658_v8 = vmul.f32 %v626_v50, %v894_v6  ;;  %v403_v14 = vmul.f32 %v371_v63, %v935_v51  ;;  %v532_v20 = vld [vmem:[%s1667_s2 + $0x90] sm:$0xff]  ;;  %v425_v22 = vld [vmem:[%s1666_s1 + $0x38] sm:$0x1] }
  0x64   :  { %v467_v19 = vmul.f32 %v435_v21, %v938_v55  ;;  %v628_v11 = vld [vmem:[%s1668_s3 + $0x90] sm:$0xff]  ;;  %v687_v38 = vadd.f32 %v655_v13, %v591_v10  ;;  %v592_v12 = vadd.f32 %v560_v47, %v496_v7  ;;  %v498_v17 = vadd.f32 %v466_v1, %v402_v61  ;;  %v373_v47 = vld [vmem:[%s1665_s0 + $0x98] sm:$0xff] }
  0x65   :  { %v563_v33 = vmul.f32 %v531_v16, %v941_v56  ;;  %712 = vst [vmem:[%s1669_s7 + $0x30] sm:$0x1] %v680_v53  ;;  %v659_v35 = vmul.f32 %v627_v9, %v944_v57  ;;  %v404_v13 = vmul.f32 %v372_v48, %v971_v40  ;;  %v468_v31 = vmul.f32 %v436_v52, %v974_v41  ;;  %v521_v63 = vld [vmem:[%s1667_s2 + $0x38] sm:$0x1] }
  0x66   :  { %v499_v34 = vadd.f32 %v467_v19, %v403_v14  ;;  %v773_v50 = vpop.eup %772  ;;  %v617_v21 = vld [vmem:[%s1668_s3 + $0x38] sm:$0x1]  ;;  %719 = vst [vmem:[%s1669_s7 + $0x68] sm:$0x1] %v687_v38  ;;  %v688_v49 = vadd.f32 %v656_v15, %v592_v12  ;;  %v594_v61 = vadd.f32 %v562_v2, %v498_v17  ;;  %v564_v16 = vmul.f32 %v532_v20, %v977_v42  ;;  %v374_v12 = vld [vmem:[%s1665_s0 + $0xa0] sm:$0x1] }
  0x67   :  { %v369_v0 = vld [vmem:[%s1665_s0 + $0x78] sm:$0x1]  ;;  %v660_v10 = vmul.f32 %v628_v11, %v980_v44  ;;  %v1372_v7 = vmul.f32 %v773_v50, %v1177_v43  ;;  %v1375_v1 = vmul.f32 %v773_v50, %v1179_v59  ;;  %v1378_v9 = vmul.f32 %v773_v50, %v1181_v23 }
  0x68   :  { %v1381_v15 = vmul.f32 %v773_v50, %v1183_v30  ;;  %v433_v2 = vld [vmem:[%s1666_s1 + $0x78] sm:$0x1]  ;;  %720 = vst [vmem:[%s1669_s7 + $0x70] sm:$0x1] %v688_v49  ;;  %v690_v59 = vadd.f32 %v658_v8, %v594_v61  ;;  %v595_v23 = vadd.f32 %v563_v33, %v499_v34  ;;  %v500_v30 = vadd.f32 %v468_v31, %v404_v13  ;;  %v438_v34 = vld [vmem:[%s1666_s1 + $0xa0] sm:$0x1] }
  0x69   :  { %v529_v48 = vld [vmem:[%s1667_s2 + $0x78] sm:$0x1]  ;;  %v405_v52 = vmul.f32 %v373_v47, %v1020_v25  ;;  %v393_v14 = vmul.f32 %v361_v54, %v1372_v7  ;;  %v457_v19 = vmul.f32 %v425_v22, %v1375_v1  ;;  %v553_v20 = vmul.f32 %v521_v63, %v1378_v9  ;;  %v534_v63 = vld [vmem:[%s1667_s2 + $0xa0] sm:$0x1]  ;;  %v375_v49 = vld [vmem:[%s1665_s0 + $0xa8] sm:$0x1] }
  0x6a   :  { %v625_v43 = vld [vmem:[%s1668_s3 + $0x78] sm:$0x1]  ;;  %v649_v11 = vmul.f32 %v617_v21, %v1381_v15  ;;  %v401_v17 = vmul.f32 %v369_v0, %v1372_v7  ;;  %v465_v33 = vmul.f32 %v433_v2, %v1375_v1  ;;  %v561_v54 = vmul.f32 %v529_v48, %v1378_v9  ;;  %722 = vst [vmem:[%s1669_s7 + $0x80] sm:$0xff] %v690_v59  ;;  %v630_v21 = vld [vmem:[%s1668_s3 + $0xa0] sm:$0x1] }
  0x6b   :  { %v437_v53 = vld [vmem:[%s1666_s1 + $0x98] sm:$0xff]  ;;  %v657_v22 = vmul.f32 %v625_v43, %v1381_v15  ;;  %v489_v13 = vadd.f32 %v457_v19, %v393_v14  ;;  %v691_v31 = vadd.f32 %v659_v35, %v595_v23  ;;  %v596_v47 = vadd.f32 %v564_v16, %v500_v30  ;;  %v439_v2 = vld [vmem:[%s1666_s1 + $0xa8] sm:$0x1]  ;;  %v376_v14 = vld [vmem:[%s1665_s0 + $0xb0] sm:$0x1] }
  0x6c   :  { %v533_v8 = vld [vmem:[%s1667_s2 + $0x98] sm:$0xff]  ;;  %v469_v50 = vmul.f32 %v437_v53, %v1023_v26  ;;  %v497_v0 = vadd.f32 %v465_v33, %v401_v17  ;;  %v406_v16 = vmul.f32 %v374_v12, %v1076_v32  ;;  %v470_v23 = vmul.f32 %v438_v34, %v1079_v36  ;;  %v535_v30 = vld [vmem:[%s1667_s2 + $0xa8] sm:$0x1]  ;;  %v632_v34 = vld [vmem:[%s1668_s3 + $0xb0] sm:$0x1] }
  0x6d   :  { %v629_v38 = vld [vmem:[%s1668_s3 + $0x98] sm:$0xff]  ;;  %v565_v61 = vmul.f32 %v533_v8, %v1026_v27  ;;  %v585_v48 = vadd.f32 %v553_v20, %v489_v13  ;;  %723 = vst [vmem:[%s1669_s7 + $0x88] sm:$0xff] %v691_v31  ;;  %v692_v43 = vadd.f32 %v660_v10, %v596_v47  ;;  %v631_v53 = vld [vmem:[%s1668_s3 + $0xa8] sm:$0x1]  ;;  %v566_v20 = vmul.f32 %v534_v63, %v1082_v39  ;;  %v440_v8 = vld [vmem:[%s1666_s1 + $0xb0] sm:$0x1] }
  0x6e   :  { %v661_v35 = vmul.f32 %v629_v38, %v1032_v29  ;;  %v501_v59 = vadd.f32 %v469_v50, %v405_v52  ;;  %v593_v19 = vadd.f32 %v561_v54, %v497_v0  ;;  %v662_v10 = vmul.f32 %v630_v21, %v1085_v45  ;;  %v536_v38 = vld [vmem:[%s1667_s2 + $0xb0] sm:$0x1]  ;;  %v377_v13 = vld [vmem:[%s1665_s0 + $0xb8] sm:$0x1] }
  0x6f   :  { %v407_v52 = vmul.f32 %v375_v49, %v1154_v24  ;;  %v681_v12 = vadd.f32 %v649_v11, %v585_v48  ;;  %724 = vst [vmem:[%s1669_s7 + $0x90] sm:$0xff] %v692_v43  ;;  %v502_v33 = vadd.f32 %v470_v23, %v406_v16  ;;  %v471_v54 = vmul.f32 %v439_v2, %v1157_v28  ;;  %v441_v11 = vld [vmem:[%s1666_s1 + $0xb8] sm:$0x1]  ;;  %v378_v2 = vld [vmem:[%s1665_s0 + $0xc0] sm:$0xff] }
  0x70   :  { %v597_v17 = vadd.f32 %v565_v61, %v501_v59  ;;  %v689_v31 = vadd.f32 %v657_v22, %v593_v19  ;;  %v567_v47 = vmul.f32 %v535_v30, %v1160_v62  ;;  %v663_v50 = vmul.f32 %v631_v53, %v1163_v18  ;;  %v537_v21 = vld [vmem:[%s1667_s2 + $0xb8] sm:$0x1]  ;;  %v442_v48 = vld [vmem:[%s1666_s1 + $0xc0] sm:$0xff] }
  0x71   :  { %v408_v63 = vmul.f32 %v376_v14, %v1234_v58  ;;  %713 = vst [vmem:[%s1669_s7 + $0x38] sm:$0x1] %v681_v12  ;;  %v598_v0 = vadd.f32 %v566_v20, %v502_v33  ;;  %v503_v61 = vadd.f32 %v471_v54, %v407_v52  ;;  %v472_v16 = vmul.f32 %v440_v8, %v1237_v60  ;;  %v633_v22 = vld [vmem:[%s1668_s3 + $0xb8] sm:$0x1]  ;;  %v538_v30 = vld [vmem:[%s1667_s2 + $0xc0] sm:$0xff]  ;;  %v379_v8 = vld [vmem:[%s1665_s0 + $0xc8] sm:$0xff] }
  0x72   :  { %v693_v49 = vadd.f32 %v661_v35, %v597_v17  ;;  %721 = vst [vmem:[%s1669_s7 + $0x78] sm:$0x1] %v689_v31  ;;  %v568_v35 = vmul.f32 %v536_v38, %v1240_v37  ;;  %v664_v43 = vmul.f32 %v632_v34, %v1252_v46  ;;  %v409_v59 = vmul.f32 %v377_v13, %v1372_v7  ;;  %v634_v53 = vld [vmem:[%s1668_s3 + $0xc0] sm:$0xff]  ;;  %v443_v38 = vld [vmem:[%s1666_s1 + $0xc8] sm:$0xff]  ;;  %v380_v13 = vld [vmem:[%s1665_s0 + $0xd0] sm:$0xff] }
  0x73   :  { %v473_v23 = vmul.f32 %v441_v11, %v1375_v1  ;;  %v694_v14 = vadd.f32 %v662_v10, %v598_v0  ;;  %v599_v19 = vadd.f32 %v567_v47, %v503_v61  ;;  %v504_v20 = vadd.f32 %v472_v16, %v408_v63  ;;  %v539_v10 = vld [vmem:[%s1667_s2 + $0xc8] sm:$0xff]  ;;  %v444_v47 = vld [vmem:[%s1666_s1 + $0xd0] sm:$0xff] }
  0x74   :  { %725 = vst [vmem:[%s1669_s7 + $0x98] sm:$0xff] %v693_v49  ;;  %v569_v52 = vmul.f32 %v537_v21, %v1378_v9  ;;  %v665_v17 = vmul.f32 %v633_v22, %v1381_v15  ;;  %v410_v33 = vmul.f32 %v378_v2, %v885_v3  ;;  %v474_v54 = vmul.f32 %v442_v48, %v888_v4  ;;  %v635_v34 = vld [vmem:[%s1668_s3 + $0xc8] sm:$0xff]  ;;  %v540_v63 = vld [vmem:[%s1667_s2 + $0xd0] sm:$0xff]  ;;  %v541_v2 = vld [vmem:[%s1667_s2 + $0xd8] sm:$0xff] }
  0x75   :  { %v505_v12 = vadd.f32 %v473_v23, %v409_v59  ;;  %726 = vst [vmem:[%s1669_s7 + $0xa0] sm:$0x1] %v694_v14  ;;  %v695_v11 = vadd.f32 %v663_v50, %v599_v19  ;;  %v600_v3 = vadd.f32 %v568_v35, %v504_v20  ;;  %v570_v4 = vmul.f32 %v538_v30, %v891_v5  ;;  %v636_v5 = vld [vmem:[%s1668_s3 + $0xd0] sm:$0xff]  ;;  %v445_v50 = vld [vmem:[%s1666_s1 + $0xd8] sm:$0xff]  ;;  %v542_v14 = vld [vmem:[%s1667_s2 + $0xe0] sm:$0x1] }
  0x76   :  { %v666_v31 = vmul.f32 %v634_v53, %v894_v6  ;;  %v506_v49 = vadd.f32 %v474_v54, %v410_v33  ;;  %v411_v0 = vmul.f32 %v379_v8, %v935_v51  ;;  %v475_v61 = vmul.f32 %v443_v38, %v938_v55  ;;  %v381_v6 = vld [vmem:[%s1665_s0 + $0xd8] sm:$0xff]  ;;  %v638_v19 = vld [vmem:[%s1668_s3 + $0xe0] sm:$0x1]  ;;  %v543_v33 = vld [vmem:[%s1667_s2 + $0xe8] sm:$0x1] }
  0x77   :  { %v601_v21 = vadd.f32 %v569_v52, %v505_v12  ;;  %727 = vst [vmem:[%s1669_s7 + $0xa8] sm:$0x1] %v695_v11  ;;  %v696_v16 = vadd.f32 %v664_v43, %v600_v3  ;;  %v571_v51 = vmul.f32 %v539_v10, %v941_v56  ;;  %v667_v55 = vmul.f32 %v635_v34, %v944_v57  ;;  %v637_v30 = vld [vmem:[%s1668_s3 + $0xd8] sm:$0xff]  ;;  %v382_v56 = vld [vmem:[%s1665_s0 + $0xe0] sm:$0x1] }
  0x78   :  { %v412_v22 = vmul.f32 %v380_v13, %v971_v40  ;;  %v602_v35 = vadd.f32 %v570_v4, %v506_v49  ;;  %v507_v59 = vadd.f32 %v475_v61, %v411_v0  ;;  %v476_v23 = vmul.f32 %v444_v47, %v974_v41  ;;  %v446_v57 = vld [vmem:[%s1666_s1 + $0xe0] sm:$0x1]  ;;  %v384_v54 = vld [vmem:[%s1665_s0 + $0xf0] sm:$0x1]  ;;  %v449_v47 = vld [vmem:[%s1666_s1 + $0xf8] sm:$0x1] }
  0x79   :  { %v697_v48 = vadd.f32 %v665_v17, %v601_v21  ;;  %728 = vst [vmem:[%s1669_s7 + $0xb0] sm:$0x1] %v696_v16  ;;  %v572_v40 = vmul.f32 %v540_v63, %v977_v42  ;;  %v668_v41 = vmul.f32 %v636_v5, %v980_v44  ;;  %v413_v43 = vmul.f32 %v381_v6, %v1020_v25  ;;  %v383_v25 = vld [vmem:[%s1665_s0 + $0xe8] sm:$0x1]  ;;  %v448_v34 = vld [vmem:[%s1666_s1 + $0xf0] sm:$0x1] }
  0x7a   :  { %v477_v53 = vmul.f32 %v445_v50, %v1023_v26  ;;  %v698_v20 = vadd.f32 %v666_v31, %v602_v35  ;;  %v603_v42 = vadd.f32 %v571_v51, %v507_v59  ;;  %v508_v52 = vadd.f32 %v476_v23, %v412_v22  ;;  %v447_v26 = vld [vmem:[%s1666_s1 + $0xe8] sm:$0x1]  ;;  %v544_v13 = vld [vmem:[%s1667_s2 + $0xf0] sm:$0x1]  ;;  %v545_v49 = vld [vmem:[%s1667_s2 + $0xf8] sm:$0x1] }
  0x7b   :  { %729 = vst [vmem:[%s1669_s7 + $0xb8] sm:$0x1] %v697_v48  ;;  %v573_v44 = vmul.f32 %v541_v2, %v1026_v27  ;;  %v669_v38 = vmul.f32 %v637_v30, %v1032_v29  ;;  %v414_v12 = vmul.f32 %v382_v56, %v1076_v32  ;;  %v478_v17 = vmul.f32 %v446_v57, %v1079_v36  ;;  %v639_v27 = vld [vmem:[%s1668_s3 + $0xe8] sm:$0x1]  ;;  %v641_v50 = vld [vmem:[%s1668_s3 + $0xf8] sm:$0x1] }
  0x7c   :  { %v509_v8 = vadd.f32 %v477_v53, %v413_v43  ;;  %730 = vst [vmem:[%s1669_s7 + $0xc0] sm:$0xff] %v698_v20  ;;  %v699_v29 = vadd.f32 %v667_v55, %v603_v42  ;;  %v604_v32 = vadd.f32 %v572_v40, %v508_v52  ;;  %v574_v36 = vmul.f32 %v542_v14, %v1082_v39  ;;  %v640_v39 = vld [vmem:[%s1668_s3 + $0xf0] sm:$0x1] }
  0x7d   :  { %v670_v10 = vmul.f32 %v638_v19, %v1085_v45  ;;  %v510_v3 = vadd.f32 %v478_v17, %v414_v12  ;;  %v415_v4 = vmul.f32 %v383_v25, %v1154_v24  ;;  %v479_v31 = vmul.f32 %v447_v26, %v1157_v28  ;;  %v385_v45 = vld [vmem:[%s1665_s0 + $0xf8] sm:$0x1] }
  0x7e   :  { %v605_v11 = vadd.f32 %v573_v44, %v509_v8  ;;  %731 = vst [vmem:[%s1669_s7 + $0xc8] sm:$0xff] %v699_v29  ;;  %v700_v63 = vadd.f32 %v668_v41, %v604_v32  ;;  %v575_v24 = vmul.f32 %v543_v33, %v1160_v62  ;;  %v671_v28 = vmul.f32 %v639_v27, %v1163_v18 }
  0x7f   :  { %v416_v21 = vmul.f32 %v384_v54, %v1234_v58  ;;  %v606_v61 = vadd.f32 %v574_v36, %v510_v3  ;;  %v511_v5 = vadd.f32 %v479_v31, %v415_v4  ;;  %v480_v6 = vmul.f32 %v448_v34, %v1237_v60 }
  0x80   :  { %v701_v0 = vadd.f32 %v669_v38, %v605_v11  ;;  %732 = vst [vmem:[%s1669_s7 + $0xd0] sm:$0xff] %v700_v63  ;;  %v576_v62 = vmul.f32 %v544_v13, %v1240_v37  ;;  %v672_v18 = vmul.f32 %v640_v39, %v1252_v46  ;;  %v417_v58 = vmul.f32 %v385_v45, %v1372_v7 }
  0x81   :  { %v481_v16 = vmul.f32 %v449_v47, %v1375_v1  ;;  %v702_v60 = vadd.f32 %v670_v10, %v606_v61  ;;  %v607_v51 = vadd.f32 %v575_v24, %v511_v5  ;;  %v512_v55 = vadd.f32 %v480_v6, %v416_v21 }
  0x82   :  { %733 = vst [vmem:[%s1669_s7 + $0xd8] sm:$0xff] %v701_v0  ;;  %v577_v22 = vmul.f32 %v545_v49, %v1378_v9  ;;  %v673_v48 = vmul.f32 %v641_v50, %v1381_v15 }
  0x83   :  { %v513_v2 = vadd.f32 %v481_v16, %v417_v58  ;;  %734 = vst [vmem:[%s1669_s7 + $0xe0] sm:$0x1] %v702_v60  ;;  %v703_v37 = vadd.f32 %v671_v28, %v607_v51  ;;  %v608_v46 = vadd.f32 %v576_v62, %v512_v55 }
  0x85   :  { %v609_v7 = vadd.f32 %v577_v22, %v513_v2  ;;  %735 = vst [vmem:[%s1669_s7 + $0xe8] sm:$0x1] %v703_v37  ;;  %v704_v1 = vadd.f32 %v672_v18, %v608_v46 }
  0x87   :  { %v705_v35 = vadd.f32 %v673_v48, %v609_v7  ;;  %736 = vst [vmem:[%s1669_s7 + $0xf0] sm:$0x1] %v704_v1 }
  0x89   :  { %737 = vst [vmem:[%s1669_s7 + $0xf8] sm:$0x1] %v705_v35 }

// kernel: dconv_forward.5
= control target key start
LH: loop header
LB: loop body
LE: loop exit
PB: predicated region body
PF: predicated region fallthrough
CT: control target
= control target key end

     0   :  { %v294_v3 = vmov 0.0   ;;  %v295_v8 = vmov 0   ;;  %vm42_vm0 = vcmask 1043456   ;;  %vm38_vm1 = vcmask 293888   ;;  %s406_s1 = inlined_call_operand.vmem [shape: f32[36,512], index: 1, kind: input, shape index: {}]   ;;  %s407_s2 = inlined_call_operand.vmem [shape: f32[8,1], index: 2, kind: input, shape index: {}]   ;;  %s408_s3 = inlined_call_operand.vmem [shape: f32[8,1], index: 3, kind: input, shape index: {}]   ;;  %s409_s0 = inlined_call_operand.vmem [shape: f32[8,36], index: 0, kind: input, shape index: {}]   ;;  %s410_s4 = inlined_call_operand.vmem [shape: f32[8,512], index: 4, kind: output, shape index: {}]  }
   0x1   :  { %v19_v0 = vld [vmem:[%s406_s1 + $0x8] sm:$0xff]  ;;  %v21_v2 = vld [vmem:[%s406_s1 + $0x18] sm:$0xff]  ;;  %119 = vmatprep.mubr.f32.mxu0 %v294_v3  ;;  %190 = vmatprep.mubr.f32.mxu1 %v294_v3  ;;  %v18_v6 = vld [vmem:[%s406_s1] sm:$0xff] }
   0x2   :  { %v23_v1 = vld [vmem:[%s406_s1 + $0x28] sm:$0xff]  ;;  %v25_v5 = vld [vmem:[%s406_s1 + $0x38] sm:$0xff]  ;;  %v22_v7 = vld [vmem:[%s406_s1 + $0x20] sm:$0xff]  ;;  %277 = vset.pattern.permute.xlu0 %v295_v8 }
   0x3   :  { %v259_v4 = vpack.c.bf16 %v23_v1, %v19_v0  ;;  %v267_v9 = vpack.c.bf16 %v25_v5, %v21_v2  ;;  %v261_v10 = vpack.c.bf16 %v22_v7, %v18_v6  ;;  %v20_v11 = vld [vmem:[%s406_s1 + $0x10] sm:$0xff]  ;;  %v27_v13 = vld [vmem:[%s406_s1 + $0x48] sm:$0xff]  ;;  %v29_v16 = vld [vmem:[%s406_s1 + $0x58] sm:$0xff] }
   0x4   :  { %v24_v12 = vld [vmem:[%s406_s1 + $0x30] sm:$0xff]  ;;  %v31_v15 = vld [vmem:[%s406_s1 + $0x68] sm:$0xff]  ;;  %v33_v17 = vld [vmem:[%s406_s1 + $0x78] sm:$0xff] }
   0x5   :  { %260 = vmatprep.subr.bf16.mxu0 %v259_v4  ;;  %v269_v14 = vpack.c.bf16 %v24_v12, %v20_v11  ;;  %268 = vmatprep.subr.bf16.mxu1 %v267_v9  ;;  %v263_v18 = vpack.c.bf16 %v31_v15, %v27_v13  ;;  %v271_v19 = vpack.c.bf16 %v33_v17, %v29_v16  ;;  %v26_v20 = vld [vmem:[%s406_s1 + $0x40] sm:$0xff]  ;;  %v28_v22 = vld [vmem:[%s406_s1 + $0x50] sm:$0xff]  ;;  %v35_v26 = vld [vmem:[%s406_s1 + $0x88] sm:$0xf] }
   0x6   :  { %262 = vmatpush1.bf16.msra.mxu0 %v261_v10  ;;  %v30_v21 = vld [vmem:[%s406_s1 + $0x60] sm:$0xff]  ;;  %v32_v24 = vld [vmem:[%s406_s1 + $0x70] sm:$0xff]  ;;  %v37_v27 = vld [vmem:[%s406_s1 + $0x98] sm:$0xf] }
   0x7   :  { %270 = vmatpush1.bf16.msra.mxu1 %v269_v14  ;;  %v265_v23 = vpack.c.bf16 %v30_v21, %v26_v20  ;;  %264 = vmatprep.subr.bf16.mxu0 %v263_v18  ;;  %v273_v25 = vpack.c.bf16 %v32_v24, %v28_v22  ;;  %v197_v28 = vld [vmem:[%s407_s2] sm:$0xff]  ;;  %v36_v31 = vld [vmem:[%s406_s1 + $0x90] sm:$0xf] }
   0x8   :  { %272 = vmatprep.subr.bf16.mxu1 %v271_v19  ;;  %200 = vperm.xlu0 %277, %v197_v28   ;;  %v34_v29 = vld [vmem:[%s406_s1 + $0x80] sm:$0xf] }
   0x9   :  { %v207_v30 = vld [vmem:[%s408_s3] sm:$0xff] }
   0xa   :  { %266 = vmatpush1.bf16.msra.mxu0 %v265_v23  ;;  %v17_v32 = vld [vmem:[%s409_s0] sm:$0xff] }
   0xb   :  { %274 = vmatpush1.bf16.msra.mxu1 %v273_v25  ;;  %253 = vmatprep.subr.msk.mxu0 %vm42_vm0, %v35_v26 }
   0xc   :  { %256 = vmatprep.subr.msk.mxu1 %vm42_vm0, %v37_v27  ;;  %210 = vperm.xlu0 %277, %v207_v30  }
   0xe   :  { %254 = vmatpush1.msk.msra.mxu0 %vm42_vm0, %v34_v29 }
   0xf   :  { %257 = vmatpush1.msk.msra.mxu1 %vm42_vm0, %v36_v31  ;;  %255 = vmatmul.mubr.msk.f32.vlgmr.msra.gmra.mrb[0].mxu0 %vm38_vm1, %v17_v32 }
  0x10   :  { %258 = vmatmul.mubr.msk.f32.vlgmr.msra.gmra.mrb[0].mxu1 %vm38_vm1, %v17_v32 }
  0x87   :  { %v201_v33 = vpop.permute.xlu0 %200 }
  0x8b   :  { %v211_v38 = vpop.permute.xlu0 %210 }
  0xe2   :  { %v121_v34 = vpop.f32.mrb[0].mxu0 }
  0xe3   :  { %v203_v35 = vmul.f32 %v201_v33, %v121_v34  ;;  %v192_v36 = vpop.f32.mrb[0].mxu1  ;;  %v123_v37 = vpop.f32.mrb[1].mxu0 }
  0xe4   :  { %v205_v39 = vmul.f32 %v201_v33, %v192_v36  ;;  %v204_v40 = vmul.f32 %v201_v33, %v123_v37  ;;  %v194_v41 = vpop.f32.mrb[1].mxu1 }
  0xe5   :  { %v213_v42 = vadd.f32 %v211_v38, %v203_v35  ;;  %v206_v43 = vmul.f32 %v201_v33, %v194_v41 }
  0xe6   :  { %v215_v44 = vadd.f32 %v211_v38, %v205_v39  ;;  %v214_v45 = vadd.f32 %v211_v38, %v204_v40 }
  0xe7   :  { %v217_v46 = vsub.f32 0.0, %v213_v42  ;;  %v216_v47 = vadd.f32 %v211_v38, %v206_v43 }
  0xe8   :  { %v219_v48 = vsub.f32 0.0, %v215_v44  ;;  %v218_v49 = vsub.f32 0.0, %v214_v45 }
  0xe9   :  { %v221_v50 = vmul.f32 1.442695, %v217_v46  ;;  %v220_v51 = vsub.f32 0.0, %v216_v47 }
  0xea   :  { %v225_v52 = vmul.f32 1.442695, %v219_v48  ;;  %v223_v53 = vmul.f32 1.442695, %v218_v49 }
  0xeb   :  { %278 = vpow2.f32 %v221_v50  ;;  %v227_v54 = vmul.f32 1.442695, %v220_v51 }
  0xec   :  { %280 = vpow2.f32 %v225_v52 }
  0xed   :  { %282 = vpow2.f32 %v223_v53 }
  0xee   :  { %284 = vpow2.f32 %v227_v54 }
  0xf5   :  { %v279_v55 = vpop.eup %278 }
  0xf6   :  { %v281_v56 = vpop.eup %280  ;;  %v229_v57 = vadd.f32 1.0, %v279_v55 }
  0xf7   :  { %v283_v58 = vpop.eup %282  ;;  %v231_v59 = vadd.f32 1.0, %v281_v56 }
  0xf8   :  { %v285_v60 = vpop.eup %284  ;;  %286 = vrcp.f32 %v229_v57  ;;  %v230_v61 = vadd.f32 1.0, %v283_v58 }
  0xf9   :  { %288 = vrcp.f32 %v231_v59  ;;  %v232_v62 = vadd.f32 1.0, %v285_v60 }
  0xfa   :  { %290 = vrcp.f32 %v230_v61 }
  0xfb   :  { %292 = vrcp.f32 %v232_v62 }
 0x102   :  { %v287_v63 = vpop.eup %286 }
 0x103   :  { %v289_v0 = vpop.eup %288  ;;  %v241_v1 = vmul.f32 %v287_v63, %v213_v42 }
 0x104   :  { %v291_v2 = vpop.eup %290  ;;  %v243_v3 = vmul.f32 %v289_v0, %v215_v44 }
 0x105   :  { %v293_v4 = vpop.eup %292  ;;  %245 = vst [vmem:[%s410_s4] sm:$0xff] %v241_v1  ;;  %v242_v5 = vmul.f32 %v291_v2, %v214_v45 }
 0x106   :  { %247 = vst [vmem:[%s410_s4 + $0x10] sm:$0xff] %v243_v3  ;;  %v244_v6 = vmul.f32 %v293_v4, %v216_v47 }
 0x107   :  { %246 = vst [vmem:[%s410_s4 + $0x8] sm:$0xff] %v242_v5 }
 0x108   :  { %248 = vst [vmem:[%s410_s4 + $0x18] sm:$0xff] %v244_v6 }

</bundles_post_ra>
